<compile_context>
chip_gen: v5e
topology: v5e:2x2
jax: 0.10.0
libtpu: 0.0.40
codegen_flags: <defaults>
</compile_context>

<pallas_src>
import functools

import jax
import jax.numpy as jnp
import numpy as np
from jax import lax
from jax.experimental import pallas as pl
from jax.experimental.pallas import tpu as pltpu

_LPAD = 8  # left pad along W inside the scratch -> sublane-aligned interior writes


def dsconv_kernel(x_ref, wt_ref, b_ref, o_ref, xpad_ref, *, block_rows):
    """Fused depthwise(3x3, pad=1) + pointwise(1x1) for one batch element.

    x_ref    : (1, H, W, Cin)        unpadded NHWC input block
    wt_ref   : (9, Cin, Cout)        per-tap folded weights  Wt[t,ci,co] = dw[t,ci]*pw[co,ci]
    b_ref    : (1, Cout)  f32        folded bias (pw_b + pw_w @ dw_b)
    o_ref    : (1, H*W, Cout)        output block (NHWC, spatially flattened)
    xpad_ref : VMEM (H+2, W+16, Cin) padded image scratch, input dtype
    """
    _, H, W, Cin = x_ref.shape
    _, _, Cout = o_ref.shape
    R = block_rows
    n_blk = H // R
    RW = R * W

    # ---- zero only the 1-element halo border (cheap, megacore-safe) --------
    zrow = jnp.zeros((xpad_ref.shape[1], Cin), xpad_ref.dtype)
    xpad_ref[0] = zrow                                        # top pad row
    xpad_ref[H + 1] = zrow                                    # bottom pad row
    zcol = jnp.zeros((H, 8, Cin), xpad_ref.dtype)
    xpad_ref[pl.ds(1, H), pl.ds(0, 8), :] = zcol              # covers left pad col (7)
    xpad_ref[pl.ds(1, H), pl.ds(_LPAD + W, 8), :] = zcol      # covers right pad col (W+8)

    # ---- interior written at sublane offset 8 -> unmasked full-vreg stores --
    xpad_ref[pl.ds(1, H), pl.ds(_LPAD, W), :] = x_ref[0]

    bias = b_ref[...].astype(jnp.float32)                     # (1, Cout)

    # ---- row-blocked 9-tap MXU accumulation ---------------------------------
    def row_block(r, carry):
        row0 = r * R
        acc = jnp.zeros((RW, Cout), jnp.float32)
        for t in range(9):                                    # short fixed loop: unrolled
            ky, kx = t // 3, t % 3
            patch = xpad_ref[pl.ds(row0 + ky, R), pl.ds(_LPAD - 1 + kx, W), :]
            patch2 = patch.reshape(RW, Cin)                   # free relayout when W % 8 == 0
            acc = acc + jnp.dot(patch2, wt_ref[t],
                                preferred_element_type=jnp.float32)
        acc = acc + bias
        off = pl.multiple_of(r * RW, RW)
        o_ref[0, pl.ds(off, RW), :] = acc.astype(o_ref.dtype)
        return carry

    lax.fori_loop(0, n_blk, row_block, 0)


def depthwise_separable_conv(x_nchw, dw_w, dw_b, pw_w, pw_b, *, block_rows=None):
    """Matches: Conv2d(nin,nin,3,pad=1,groups=nin) -> Conv2d(nin,nout,1).

    x_nchw: (B, Cin, H, W)
    dw_w  : (Cin, 1, 3, 3)    dw_b: (Cin,)
    pw_w  : (Cout, Cin, 1, 1) pw_b: (Cout,)
    returns (B, Cout, H, W)
    """
    B, Cin, H, W = x_nchw.shape
    Cout = pw_w.shape[0]
    dtype = x_nchw.dtype

    if block_rows is None:
        block_rows = 8 if (H % 8 == 0 and H > 8) else H
    R = block_rows
    assert H % R == 0, (H, R)

    # Single input layout op (channels -> lanes); padding happens in-kernel.
    x_nhwc = jnp.transpose(x_nchw, (0, 2, 3, 1))                   # (B, H, W, Cin)

    # Fold depthwise taps into the pointwise weight (done once, host side):
    #   wt[t, ci, co] = dw_w[ci, 0, ky, kx] * pw_w[co, ci],  t = ky*3 + kx
    dw_taps = jnp.transpose(dw_w[:, 0].reshape(Cin, 9), (1, 0))    # (9, Cin)
    pw2 = pw_w[:, :, 0, 0]                                         # (Cout, Cin)
    wt = (dw_taps[:, :, None].astype(jnp.float32)
          * jnp.transpose(pw2, (1, 0))[None].astype(jnp.float32))  # (9, Cin, Cout)
    wt = wt.astype(dtype)                                          # MXU-native dtype

    # Fold the depthwise bias through the (linear) pointwise conv:
    #   pw(dw(x) + dw_b) + pw_b == pw(dw(x)) + (pw_w @ dw_b + pw_b)
    bias_eff = (pw_b.astype(jnp.float32)
                + pw2.astype(jnp.float32) @ dw_b.astype(jnp.float32))
    bias_eff = bias_eff.reshape(1, Cout)

    # VMEM budget from the actual block math (double-buffered in/out + scratch),
    # capped so it is safe on v7x (64 MiB physical) as well as v5e/v6e.
    def _ru(n, m):
        return ((n + m - 1) // m) * m

    isz = jnp.dtype(dtype).itemsize
    Wp = W + 2 * _LPAD
    vmem_need = (2 * H * _ru(W, 8) * _ru(Cin, 128) * isz            # input block x2
                 + 2 * _ru(H * W, 8) * _ru(Cout, 128) * isz         # output block x2
                 + (H + 2) * _ru(Wp, 8) * _ru(Cin, 128) * isz       # pad scratch
                 + 2 * 9 * _ru(Cin, 8) * _ru(Cout, 128) * isz       # folded weights x2
                 + 2 * 8 * 128 * 4)                                 # bias x2
    vmem_limit = int(min(max(2 * vmem_need, 16 << 20), 64 << 20))

    out_nhwc = pl.pallas_call(
        functools.partial(dsconv_kernel, block_rows=R),
        out_shape=jax.ShapeDtypeStruct((B, H * W, Cout), dtype),
        grid=(B,),
        in_specs=[
            pl.BlockSpec((1, H, W, Cin), lambda b: (b, 0, 0, 0)),
            pl.BlockSpec((9, Cin, Cout), lambda b: (0, 0, 0)),
            pl.BlockSpec((1, Cout), lambda b: (0, 0)),
        ],
        out_specs=pl.BlockSpec((1, H * W, Cout), lambda b: (b, 0, 0)),
        scratch_shapes=[pltpu.VMEM((H + 2, Wp, Cin), dtype)],
        compiler_params=pltpu.CompilerParams(
            dimension_semantics=("parallel",),
            vmem_limit_bytes=vmem_limit),
    )(x_nhwc, wt, bias_eff)

    # (B, H*W, Cout) -> (B, Cout, H, W): pure layout plumbing outside the kernel.
    return jnp.transpose(out_nhwc.reshape(B, H, W, Cout), (0, 3, 1, 2))


def reference_dsconv(x, dw_w, dw_b, pw_w, pw_b):
    """Pure-XLA reference mirroring the PyTorch module (NCHW)."""
    dw = jax.lax.conv_general_dilated(
        x, dw_w, window_strides=(1, 1), padding=((1, 1), (1, 1)),
        dimension_numbers=("NCHW", "OIHW", "NCHW"),
        feature_group_count=x.shape[1],
        precision=lax.Precision.HIGHEST)
    dw = dw + dw_b[None, :, None, None]
    pw = jax.lax.conv_general_dilated(
        dw, pw_w, window_strides=(1, 1), padding="VALID",
        dimension_numbers=("NCHW", "OIHW", "NCHW"),
        precision=lax.Precision.HIGHEST)
    return pw + pw_b[None, :, None, None]


if __name__ == "__main__":
    B, nin, nout, H, W = 2, 4, 8, 16, 16

    key = jax.random.PRNGKey(0)
    kx, k1, k2, k3, k4 = jax.random.split(key, 5)

    x = jax.random.normal(kx, (B, nin, H, W), dtype=jnp.float32)

    # Deterministic parameter init (shapes match nn.Conv2d defaults, bias=True).
    fan_dw = (nin // nin) * 3 * 3        # groups=nin -> in_ch/groups = 1
    bound_dw = 1.0 / np.sqrt(fan_dw)
    dw_w = jax.random.uniform(k1, (nin, 1, 3, 3), jnp.float32, -bound_dw, bound_dw)
    dw_b = jax.random.uniform(k2, (nin,), jnp.float32, -bound_dw, bound_dw)

    fan_pw = nin * 1 * 1
    bound_pw = 1.0 / np.sqrt(fan_pw)
    pw_w = jax.random.uniform(k3, (nout, nin, 1, 1), jnp.float32, -bound_pw, bound_pw)
    pw_b = jax.random.uniform(k4, (nout,), jnp.float32, -bound_pw, bound_pw)

    out = depthwise_separable_conv(x, dw_w, dw_b, pw_w, pw_b)
    out = jax.block_until_ready(out)

    ref = jax.block_until_ready(reference_dsconv(x, dw_w, dw_b, pw_w, pw_b))

    assert out.shape == (B, nout, H, W), out.shape
    np.testing.assert_allclose(np.asarray(out), np.asarray(ref), rtol=1e-5, atol=1e-5)

    print("KERNEL_OK")
</pallas_src>

<mosaic_0001>
module attributes {stable_mosaic.version = 11 : i64} {
  func.func @dsconv_kernel(%arg0: i32, %arg1: memref<1x16x16x4xf32, #tpu.memory_space<vmem>>, %arg2: memref<9x4x8xf32, #tpu.memory_space<vmem>>, %arg3: memref<1x8xf32, #tpu.memory_space<vmem>>, %arg4: memref<1x256x8xf32, #tpu.memory_space<vmem>>, %arg5: memref<18x32x4xf32, #tpu.memory_space<vmem>>) attributes {dimension_semantics = [#tpu.dimension_semantics<parallel>], iteration_bounds = array<i64: 2>, scalar_prefetch = 0 : i64, scratch_operands = 1 : i64, tpu.core_type = #tpu.core_type<tc>, window_params = [{transform_indices = @transform_0, window_bounds = array<i64: 1, 16, 16, 4>}, {pipeline_mode = #tpu.pipeline_mode<synchronous>, transform_indices = @transform_1, window_bounds = array<i64: 9, 4, 8>}, {pipeline_mode = #tpu.pipeline_mode<synchronous>, transform_indices = @transform_2, window_bounds = array<i64: 1, 8>}, {transform_indices = @transform_3, window_bounds = array<i64: 1, 256, 8>}]} {
    %cst = arith.constant 0.000000e+00 : f32
    %0 = vector.broadcast %cst : f32 to vector<32x4xf32>
    %c0 = arith.constant 0 : index
    %c0_0 = arith.constant 0 : index
    %c0_1 = arith.constant 0 : index
    %1 = vector.load %arg5[%c0, %c0_0, %c0_1] : memref<18x32x4xf32, #tpu.memory_space<vmem>>, vector<1x32x4xf32>
    %2 = vector.shape_cast %1 : vector<1x32x4xf32> to vector<32x4xf32>
    %3 = vector.shape_cast %0 : vector<32x4xf32> to vector<1x32x4xf32>
    tpu.vector_store %arg5[%c0, %c0_0, %c0_1], %3 {strides = array<i32>} : memref<18x32x4xf32, #tpu.memory_space<vmem>>, vector<1x32x4xf32>,
    %c17 = arith.constant 17 : index
    %c0_2 = arith.constant 0 : index
    %c0_3 = arith.constant 0 : index
    %4 = vector.load %arg5[%c17, %c0_2, %c0_3] : memref<18x32x4xf32, #tpu.memory_space<vmem>>, vector<1x32x4xf32>
    %5 = vector.shape_cast %4 : vector<1x32x4xf32> to vector<32x4xf32>
    %6 = vector.shape_cast %0 : vector<32x4xf32> to vector<1x32x4xf32>
    tpu.vector_store %arg5[%c17, %c0_2, %c0_3], %6 {strides = array<i32>} : memref<18x32x4xf32, #tpu.memory_space<vmem>>, vector<1x32x4xf32>,
    %cst_4 = arith.constant 0.000000e+00 : f32
    %7 = vector.broadcast %cst_4 : f32 to vector<16x8x4xf32>
    %c1 = arith.constant 1 : index
    %c0_5 = arith.constant 0 : index
    %c0_6 = arith.constant 0 : index
    %8 = vector.load %arg5[%c1, %c0_5, %c0_6] : memref<18x32x4xf32, #tpu.memory_space<vmem>>, vector<16x8x4xf32>
    tpu.vector_store %arg5[%c1, %c0_5, %c0_6], %7 {strides = array<i32>} : memref<18x32x4xf32, #tpu.memory_space<vmem>>, vector<16x8x4xf32>,
    %c1_7 = arith.constant 1 : index
    %c24 = arith.constant 24 : index
    %c0_8 = arith.constant 0 : index
    %9 = vector.load %arg5[%c1_7, %c24, %c0_8] : memref<18x32x4xf32, #tpu.memory_space<vmem>>, vector<16x8x4xf32>
    tpu.vector_store %arg5[%c1_7, %c24, %c0_8], %7 {strides = array<i32>} : memref<18x32x4xf32, #tpu.memory_space<vmem>>, vector<16x8x4xf32>,
    %c0_9 = arith.constant 0 : index
    %c0_10 = arith.constant 0 : index
    %c0_11 = arith.constant 0 : index
    %c0_12 = arith.constant 0 : index
    %10 = vector.load %arg1[%c0_9, %c0_10, %c0_11, %c0_12] : memref<1x16x16x4xf32, #tpu.memory_space<vmem>>, vector<1x16x16x4xf32>
    %11 = vector.shape_cast %10 : vector<1x16x16x4xf32> to vector<16x16x4xf32>
    %c1_13 = arith.constant 1 : index
    %c8 = arith.constant 8 : index
    %c0_14 = arith.constant 0 : index
    %12 = vector.load %arg5[%c1_13, %c8, %c0_14] : memref<18x32x4xf32, #tpu.memory_space<vmem>>, vector<16x16x4xf32>
    tpu.vector_store %arg5[%c1_13, %c8, %c0_14], %11 {strides = array<i32>} : memref<18x32x4xf32, #tpu.memory_space<vmem>>, vector<16x16x4xf32>,
    %c0_15 = arith.constant 0 : index
    %c0_16 = arith.constant 0 : index
    %13 = vector.load %arg3[%c0_15, %c0_16] : memref<1x8xf32, #tpu.memory_space<vmem>>, vector<1x8xf32>
    %c0_i32 = arith.constant 0 : i32
    %c2_i32 = arith.constant 2 : i32
    %14 = arith.addi %c0_i32, %c2_i32 : i32
    %c1_i32 = arith.constant 1 : i32
    scf.for %arg6 = %c0_i32 to %14 step %c1_i32  : i32 {
      %c8_i32 = arith.constant 8 : i32
      %15 = arith.muli %arg6, %c8_i32 : i32
      %cst_18 = arith.constant 0.000000e+00 : f32
      %16 = vector.broadcast %cst_18 : f32 to vector<128x8xf32>
      %c0_i32_19 = arith.constant 0 : i32
      %17 = arith.addi %15, %c0_i32_19 : i32
      %18 = arith.index_cast %17 : i32 to index
      %c7 = arith.constant 7 : index
      %c0_20 = arith.constant 0 : index
      %19 = vector.load %arg5[%18, %c7, %c0_20] : memref<18x32x4xf32, #tpu.memory_space<vmem>>, vector<8x16x4xf32>
      %20 = vector.shape_cast %19 : vector<8x16x4xf32> to vector<128x4xf32>
      %c0_21 = arith.constant 0 : index
      %c0_22 = arith.constant 0 : index
      %c0_23 = arith.constant 0 : index
      %21 = vector.load %arg2[%c0_21, %c0_22, %c0_23] : memref<9x4x8xf32, #tpu.memory_space<vmem>>, vector<1x4x8xf32>
      %22 = vector.shape_cast %21 : vector<1x4x8xf32> to vector<4x8xf32>
      %cst_24 = arith.constant dense<0.000000e+00> : vector<128x8xf32>
      %23 = tpu.matmul %20, %22, %cst_24 {dimension_numbers = #tpu.dot_dimension_numbers<[1], [0], [0], [1], [0, 0, 1, 1], [], []>} : vector<128x4xf32>, vector<4x8xf32>, vector<128x8xf32> -> vector<128x8xf32>
      %24 = arith.addf %16, %23 : vector<128x8xf32>
      %c0_i32_25 = arith.constant 0 : i32
      %25 = arith.addi %15, %c0_i32_25 : i32
      %26 = arith.index_cast %25 : i32 to index
      %c8_26 = arith.constant 8 : index
      %c0_27 = arith.constant 0 : index
      %27 = vector.load %arg5[%26, %c8_26, %c0_27] : memref<18x32x4xf32, #tpu.memory_space<vmem>>, vector<8x16x4xf32>
      %28 = vector.shape_cast %27 : vector<8x16x4xf32> to vector<128x4xf32>
      %c1_28 = arith.constant 1 : index
      %c0_29 = arith.constant 0 : index
      %c0_30 = arith.constant 0 : index
      %29 = vector.load %arg2[%c1_28, %c0_29, %c0_30] : memref<9x4x8xf32, #tpu.memory_space<vmem>>, vector<1x4x8xf32>
      %30 = vector.shape_cast %29 : vector<1x4x8xf32> to vector<4x8xf32>
      %cst_31 = arith.constant dense<0.000000e+00> : vector<128x8xf32>
      %31 = tpu.matmul %28, %30, %cst_31 {dimension_numbers = #tpu.dot_dimension_numbers<[1], [0], [0], [1], [0, 0, 1, 1], [], []>} : vector<128x4xf32>, vector<4x8xf32>, vector<128x8xf32> -> vector<128x8xf32>
      %32 = arith.addf %24, %31 : vector<128x8xf32>
      %c0_i32_32 = arith.constant 0 : i32
      %33 = arith.addi %15, %c0_i32_32 : i32
      %34 = arith.index_cast %33 : i32 to index
      %c9 = arith.constant 9 : index
      %c0_33 = arith.constant 0 : index
      %35 = vector.load %arg5[%34, %c9, %c0_33] : memref<18x32x4xf32, #tpu.memory_space<vmem>>, vector<8x16x4xf32>
      %36 = vector.shape_cast %35 : vector<8x16x4xf32> to vector<128x4xf32>
      %c2 = arith.constant 2 : index
      %c0_34 = arith.constant 0 : index
      %c0_35 = arith.constant 0 : index
      %37 = vector.load %arg2[%c2, %c0_34, %c0_35] : memref<9x4x8xf32, #tpu.memory_space<vmem>>, vector<1x4x8xf32>
      %38 = vector.shape_cast %37 : vector<1x4x8xf32> to vector<4x8xf32>
      %cst_36 = arith.constant dense<0.000000e+00> : vector<128x8xf32>
      %39 = tpu.matmul %36, %38, %cst_36 {dimension_numbers = #tpu.dot_dimension_numbers<[1], [0], [0], [1], [0, 0, 1, 1], [], []>} : vector<128x4xf32>, vector<4x8xf32>, vector<128x8xf32> -> vector<128x8xf32>
      %40 = arith.addf %32, %39 : vector<128x8xf32>
      %c1_i32_37 = arith.constant 1 : i32
      %41 = arith.addi %15, %c1_i32_37 : i32
      %42 = arith.index_cast %41 : i32 to index
      %c7_38 = arith.constant 7 : index
      %c0_39 = arith.constant 0 : index
      %43 = vector.load %arg5[%42, %c7_38, %c0_39] : memref<18x32x4xf32, #tpu.memory_space<vmem>>, vector<8x16x4xf32>
      %44 = vector.shape_cast %43 : vector<8x16x4xf32> to vector<128x4xf32>
      %c3 = arith.constant 3 : index
      %c0_40 = arith.constant 0 : index
      %c0_41 = arith.constant 0 : index
      %45 = vector.load %arg2[%c3, %c0_40, %c0_41] : memref<9x4x8xf32, #tpu.memory_space<vmem>>, vector<1x4x8xf32>
      %46 = vector.shape_cast %45 : vector<1x4x8xf32> to vector<4x8xf32>
      %cst_42 = arith.constant dense<0.000000e+00> : vector<128x8xf32>
      %47 = tpu.matmul %44, %46, %cst_42 {dimension_numbers = #tpu.dot_dimension_numbers<[1], [0], [0], [1], [0, 0, 1, 1], [], []>} : vector<128x4xf32>, vector<4x8xf32>, vector<128x8xf32> -> vector<128x8xf32>
      %48 = arith.addf %40, %47 : vector<128x8xf32>
      %c1_i32_43 = arith.constant 1 : i32
      %49 = arith.addi %15, %c1_i32_43 : i32
      %50 = arith.index_cast %49 : i32 to index
      %c8_44 = arith.constant 8 : index
      %c0_45 = arith.constant 0 : index
      %51 = vector.load %arg5[%50, %c8_44, %c0_45] : memref<18x32x4xf32, #tpu.memory_space<vmem>>, vector<8x16x4xf32>
      %52 = vector.shape_cast %51 : vector<8x16x4xf32> to vector<128x4xf32>
      %c4 = arith.constant 4 : index
      %c0_46 = arith.constant 0 : index
      %c0_47 = arith.constant 0 : index
      %53 = vector.load %arg2[%c4, %c0_46, %c0_47] : memref<9x4x8xf32, #tpu.memory_space<vmem>>, vector<1x4x8xf32>
      %54 = vector.shape_cast %53 : vector<1x4x8xf32> to vector<4x8xf32>
      %cst_48 = arith.constant dense<0.000000e+00> : vector<128x8xf32>
      %55 = tpu.matmul %52, %54, %cst_48 {dimension_numbers = #tpu.dot_dimension_numbers<[1], [0], [0], [1], [0, 0, 1, 1], [], []>} : vector<128x4xf32>, vector<4x8xf32>, vector<128x8xf32> -> vector<128x8xf32>
      %56 = arith.addf %48, %55 : vector<128x8xf32>
      %c1_i32_49 = arith.constant 1 : i32
      %57 = arith.addi %15, %c1_i32_49 : i32
      %58 = arith.index_cast %57 : i32 to index
      %c9_50 = arith.constant 9 : index
      %c0_51 = arith.constant 0 : index
      %59 = vector.load %arg5[%58, %c9_50, %c0_51] : memref<18x32x4xf32, #tpu.memory_space<vmem>>, vector<8x16x4xf32>
      %60 = vector.shape_cast %59 : vector<8x16x4xf32> to vector<128x4xf32>
      %c5 = arith.constant 5 : index
      %c0_52 = arith.constant 0 : index
      %c0_53 = arith.constant 0 : index
      %61 = vector.load %arg2[%c5, %c0_52, %c0_53] : memref<9x4x8xf32, #tpu.memory_space<vmem>>, vector<1x4x8xf32>
      %62 = vector.shape_cast %61 : vector<1x4x8xf32> to vector<4x8xf32>
      %cst_54 = arith.constant dense<0.000000e+00> : vector<128x8xf32>
      %63 = tpu.matmul %60, %62, %cst_54 {dimension_numbers = #tpu.dot_dimension_numbers<[1], [0], [0], [1], [0, 0, 1, 1], [], []>} : vector<128x4xf32>, vector<4x8xf32>, vector<128x8xf32> -> vector<128x8xf32>
      %64 = arith.addf %56, %63 : vector<128x8xf32>
      %c2_i32_55 = arith.constant 2 : i32
      %65 = arith.addi %15, %c2_i32_55 : i32
      %66 = arith.index_cast %65 : i32 to index
      %c7_56 = arith.constant 7 : index
      %c0_57 = arith.constant 0 : index
      %67 = vector.load %arg5[%66, %c7_56, %c0_57] : memref<18x32x4xf32, #tpu.memory_space<vmem>>, vector<8x16x4xf32>
      %68 = vector.shape_cast %67 : vector<8x16x4xf32> to vector<128x4xf32>
      %c6 = arith.constant 6 : index
      %c0_58 = arith.constant 0 : index
      %c0_59 = arith.constant 0 : index
      %69 = vector.load %arg2[%c6, %c0_58, %c0_59] : memref<9x4x8xf32, #tpu.memory_space<vmem>>, vector<1x4x8xf32>
      %70 = vector.shape_cast %69 : vector<1x4x8xf32> to vector<4x8xf32>
      %cst_60 = arith.constant dense<0.000000e+00> : vector<128x8xf32>
      %71 = tpu.matmul %68, %70, %cst_60 {dimension_numbers = #tpu.dot_dimension_numbers<[1], [0], [0], [1], [0, 0, 1, 1], [], []>} : vector<128x4xf32>, vector<4x8xf32>, vector<128x8xf32> -> vector<128x8xf32>
      %72 = arith.addf %64, %71 : vector<128x8xf32>
      %c2_i32_61 = arith.constant 2 : i32
      %73 = arith.addi %15, %c2_i32_61 : i32
      %74 = arith.index_cast %73 : i32 to index
      %c8_62 = arith.constant 8 : index
      %c0_63 = arith.constant 0 : index
      %75 = vector.load %arg5[%74, %c8_62, %c0_63] : memref<18x32x4xf32, #tpu.memory_space<vmem>>, vector<8x16x4xf32>
      %76 = vector.shape_cast %75 : vector<8x16x4xf32> to vector<128x4xf32>
      %c7_64 = arith.constant 7 : index
      %c0_65 = arith.constant 0 : index
      %c0_66 = arith.constant 0 : index
      %77 = vector.load %arg2[%c7_64, %c0_65, %c0_66] : memref<9x4x8xf32, #tpu.memory_space<vmem>>, vector<1x4x8xf32>
      %78 = vector.shape_cast %77 : vector<1x4x8xf32> to vector<4x8xf32>
      %cst_67 = arith.constant dense<0.000000e+00> : vector<128x8xf32>
      %79 = tpu.matmul %76, %78, %cst_67 {dimension_numbers = #tpu.dot_dimension_numbers<[1], [0], [0], [1], [0, 0, 1, 1], [], []>} : vector<128x4xf32>, vector<4x8xf32>, vector<128x8xf32> -> vector<128x8xf32>
      %80 = arith.addf %72, %79 : vector<128x8xf32>
      %c2_i32_68 = arith.constant 2 : i32
      %81 = arith.addi %15, %c2_i32_68 : i32
      %82 = arith.index_cast %81 : i32 to index
      %c9_69 = arith.constant 9 : index
      %c0_70 = arith.constant 0 : index
      %83 = vector.load %arg5[%82, %c9_69, %c0_70] : memref<18x32x4xf32, #tpu.memory_space<vmem>>, vector<8x16x4xf32>
      %84 = vector.shape_cast %83 : vector<8x16x4xf32> to vector<128x4xf32>
      %c8_71 = arith.constant 8 : index
      %c0_72 = arith.constant 0 : index
      %c0_73 = arith.constant 0 : index
      %85 = vector.load %arg2[%c8_71, %c0_72, %c0_73] : memref<9x4x8xf32, #tpu.memory_space<vmem>>, vector<1x4x8xf32>
      %86 = vector.shape_cast %85 : vector<1x4x8xf32> to vector<4x8xf32>
      %cst_74 = arith.constant dense<0.000000e+00> : vector<128x8xf32>
      %87 = tpu.matmul %84, %86, %cst_74 {dimension_numbers = #tpu.dot_dimension_numbers<[1], [0], [0], [1], [0, 0, 1, 1], [], []>} : vector<128x4xf32>, vector<4x8xf32>, vector<128x8xf32> -> vector<128x8xf32>
      %88 = arith.addf %80, %87 : vector<128x8xf32>
      %89 = vector.broadcast %13 : vector<1x8xf32> to vector<128x8xf32>
      %90 = arith.addf %88, %89 : vector<128x8xf32>
      %c128_i32 = arith.constant 128 : i32
      %91 = arith.muli %arg6, %c128_i32 : i32
      %92 = tpu.assume_multiple %91, 128 : i32
      %c0_75 = arith.constant 0 : index
      %93 = arith.index_cast %92 : i32 to index
      %c0_76 = arith.constant 0 : index
      %94 = vector.load %arg4[%c0_75, %93, %c0_76] : memref<1x256x8xf32, #tpu.memory_space<vmem>>, vector<1x128x8xf32>
      %95 = vector.shape_cast %94 : vector<1x128x8xf32> to vector<128x8xf32>
      %96 = vector.shape_cast %90 : vector<128x8xf32> to vector<1x128x8xf32>
      tpu.vector_store %arg4[%c0_75, %93, %c0_76], %96 {strides = array<i32>} : memref<1x256x8xf32, #tpu.memory_space<vmem>>, vector<1x128x8xf32>,
    }
    %c2_i32_17 = arith.constant 2 : i32
    return
  }
  func.func @transform_0(%arg0: i32) -> (i32, i32, i32, i32) {
    %c0_i32 = arith.constant 0 : i32
    %c0_i32_0 = arith.constant 0 : i32
    %c0_i32_1 = arith.constant 0 : i32
    %c0_i32_2 = arith.constant 0 : i32
    return %arg0, %c0_i32, %c0_i32_0, %c0_i32_1 : i32, i32, i32, i32
  }
  func.func @transform_1(%arg0: i32) -> (i32, i32, i32) {
    %c0_i32 = arith.constant 0 : i32
    %c0_i32_0 = arith.constant 0 : i32
    %c0_i32_1 = arith.constant 0 : i32
    %c0_i32_2 = arith.constant 0 : i32
    return %c0_i32, %c0_i32_0, %c0_i32_1 : i32, i32, i32
  }
  func.func @transform_2(%arg0: i32) -> (i32, i32) {
    %c0_i32 = arith.constant 0 : i32
    %c0_i32_0 = arith.constant 0 : i32
    %c0_i32_1 = arith.constant 0 : i32
    return %c0_i32, %c0_i32_0 : i32, i32
  }
  func.func @transform_3(%arg0: i32) -> (i32, i32, i32) {
    %c0_i32 = arith.constant 0 : i32
    %c0_i32_0 = arith.constant 0 : i32
    %c0_i32_1 = arith.constant 0 : i32
    return %arg0, %c0_i32, %c0_i32_0 : i32, i32, i32
  }
}

</mosaic_0001>

<bundles_post_ra>
// kernel: tpu_custom_call.1
= control target key start
LH: loop header
LB: loop body
LE: loop exit
PB: predicated region body
PF: predicated region fallthrough
CT: control target
= control target key end

     0   :  { %s2059_s12 = smov 0   ;;  %s2793_s0 = inlined_call_operand.vmem [shape: f32[2,16,16,4], index: 0, kind: input, shape index: {}]   ;;  %s2794_s1 = inlined_call_operand.vmem [shape: f32[9,4,8], index: 1, kind: input, shape index: {}]   ;;  %s2795_s2 = inlined_call_operand.vmem [shape: f32[1,8], index: 2, kind: input, shape index: {}]   ;;  %s2796_s3 = inlined_call_operand.vmem [shape: f32[2,256,8], index: 3, kind: output, shape index: {}]  }
   0x1 LB: > { %s1722_s13 = sadd.s32 4294967295, %s2032_s12   ;;  %p1726_p0 = scmp.ge.s32.totalorder %s2032_s12, 1  ;;  %s2032_s12 = sphi %s2059_s12, %s13_s12  }
   0x2   : > { %p137_p1 = scmp.lt.s32.totalorder %s2032_s12, 3 }
   0x4   : > { %p138_p2 = pnand %p1726_p0, %p137_p1 }
   0x5   : > { %p161_p3 = scmp.lt.s32.totalorder (!%p138_p2), %s1722_s13, 1  ;;  %s2193_s23 = smov (!%p138_p2), 0  }
   0x6   : > { %141 = sbr.rel (%p138_p2) target bundleno = 514 (0x202), region = 32 }
   0xb   : > { %vm171_vm0 = vcmask 31744   ;;  %v2038_v0 = vmov 0.0   ;;  %s2809_s13 = smov (!%p161_p3, %s1722_s13), 1  ;;  %v2088_v1 = vld [vmem:[%s2795_s2] sm:$0x1] }
   0xc   : > { %172 = vst.msk [vmem:[#allocation2] sm:$0xff] %vm171_vm0, %v2038_v0  ;;  %s1997_s14 = sshll.u32 %s2809_s13, 8 }
   0xd   : > { %173 = vst.msk [vmem:[#allocation2 + $0x8] sm:$0xff] %vm171_vm0, %v2038_v0  ;;  %s2080_s17 = scalar_lea.vmem %s2796_s3, %s1997_s14  ;;  %s2122_s22 = scalar_lea.vmem %s2793_s0, %s1997_s14 }
   0xe   : > { %174 = vst.msk [vmem:[#allocation2 + $0x10] sm:$0xff] %vm171_vm0, %v2038_v0  ;;  %v214_v2 = vld [vmem:[%s2122_s22] sm:$0xff]  ;;  %v215_v3 = vld [vmem:[%s2122_s22 + $0x8] sm:$0xff]  ;;  %v216_v4 = vld [vmem:[%s2122_s22 + $0x10] sm:$0xff] }
   0xf   : > { %175 = vst.msk [vmem:[#allocation2 + $0x18] sm:$0xff] %vm171_vm0, %v2038_v0  ;;  %v217_v5 = vld [vmem:[%s2122_s22 + $0x18] sm:$0xff]  ;;  %v218_v6 = vld [vmem:[%s2122_s22 + $0x20] sm:$0xff]  ;;  %v219_v7 = vld [vmem:[%s2122_s22 + $0x28] sm:$0xff] }
  0x10   : > { %177 = vst.msk [vmem:[#allocation2 + $0x220] sm:$0xff] %vm171_vm0, %v2038_v0  ;;  %v220_v8 = vld [vmem:[%s2122_s22 + $0x30] sm:$0xff]  ;;  %v221_v9 = vld [vmem:[%s2122_s22 + $0x38] sm:$0xff]  ;;  %v222_v10 = vld [vmem:[%s2122_s22 + $0x40] sm:$0xff] }
  0x11   : > { %178 = vst.msk [vmem:[#allocation2 + $0x228] sm:$0xff] %vm171_vm0, %v2038_v0  ;;  %v223_v11 = vld [vmem:[%s2122_s22 + $0x48] sm:$0xff]  ;;  %v224_v12 = vld [vmem:[%s2122_s22 + $0x50] sm:$0xff]  ;;  %v225_v13 = vld [vmem:[%s2122_s22 + $0x58] sm:$0xff] }
  0x12   : > { %179 = vst.msk [vmem:[#allocation2 + $0x230] sm:$0xff] %vm171_vm0, %v2038_v0  ;;  %v226_v14 = vld [vmem:[%s2122_s22 + $0x60] sm:$0xff]  ;;  %v227_v15 = vld [vmem:[%s2122_s22 + $0x68] sm:$0xff]  ;;  %v228_v16 = vld [vmem:[%s2122_s22 + $0x70] sm:$0xff] }
  0x13   : > { %180 = vst.msk [vmem:[#allocation2 + $0x238] sm:$0xff] %vm171_vm0, %v2038_v0  ;;  %v229_v17 = vld [vmem:[%s2122_s22 + $0x78] sm:$0xff]  ;;  %v230_v18 = vld [vmem:[%s2122_s22 + $0x80] sm:$0xff]  ;;  %v231_v19 = vld [vmem:[%s2122_s22 + $0x88] sm:$0xff] }
  0x14   : > { %2798 = vst [vmem:[#allocation3_spill] sm:$0xff] %v2088_v1  ;;  %v232_v20 = vld [vmem:[%s2122_s22 + $0x90] sm:$0xff]  ;;  %v233_v21 = vld [vmem:[%s2122_s22 + $0x98] sm:$0xff]  ;;  %v234_v22 = vld [vmem:[%s2122_s22 + $0xa0] sm:$0xff] }
  0x15   : > { %182 = vst.msk [vmem:[#allocation2 + $0x20] sm:$0xff] %vm171_vm0, %v2038_v0  ;;  %v235_v23 = vld [vmem:[%s2122_s22 + $0xa8] sm:$0xff]  ;;  %v236_v24 = vld [vmem:[%s2122_s22 + $0xb0] sm:$0xff]  ;;  %v237_v25 = vld [vmem:[%s2122_s22 + $0xb8] sm:$0xff] }
  0x16   : > { %183 = vst.msk [vmem:[#allocation2 + $0x40] sm:$0xff] %vm171_vm0, %v2038_v0  ;;  %v238_v26 = vld [vmem:[%s2122_s22 + $0xc0] sm:$0xff]  ;;  %v239_v27 = vld [vmem:[%s2122_s22 + $0xc8] sm:$0xff]  ;;  %v240_v28 = vld [vmem:[%s2122_s22 + $0xd0] sm:$0xff] }
  0x17   : > { %184 = vst.msk [vmem:[#allocation2 + $0x60] sm:$0xff] %vm171_vm0, %v2038_v0  ;;  %v241_v29 = vld [vmem:[%s2122_s22 + $0xd8] sm:$0xff]  ;;  %v242_v30 = vld [vmem:[%s2122_s22 + $0xe0] sm:$0xff]  ;;  %v243_v31 = vld [vmem:[%s2122_s22 + $0xe8] sm:$0xff] }
  0x18   : > { %185 = vst.msk [vmem:[#allocation2 + $0x80] sm:$0xff] %vm171_vm0, %v2038_v0  ;;  %v244_v32 = vld [vmem:[%s2122_s22 + $0xf0] sm:$0xff]  ;;  %v245_v33 = vld [vmem:[%s2122_s22 + $0xf8] sm:$0xff] }
  0x19   : > { %186 = vst.msk [vmem:[#allocation2 + $0xa0] sm:$0xff] %vm171_vm0, %v2038_v0 }
  0x1a   : > { %187 = vst.msk [vmem:[#allocation2 + $0xc0] sm:$0xff] %vm171_vm0, %v2038_v0 }
  0x1b   : > { %188 = vst.msk [vmem:[#allocation2 + $0xe0] sm:$0xff] %vm171_vm0, %v2038_v0 }
  0x1c   : > { %189 = vst.msk [vmem:[#allocation2 + $0x100] sm:$0xff] %vm171_vm0, %v2038_v0 }
  0x1d   : > { %190 = vst.msk [vmem:[#allocation2 + $0x120] sm:$0xff] %vm171_vm0, %v2038_v0 }
  0x1e   : > { %191 = vst.msk [vmem:[#allocation2 + $0x140] sm:$0xff] %vm171_vm0, %v2038_v0 }
  0x1f   : > { %192 = vst.msk [vmem:[#allocation2 + $0x160] sm:$0xff] %vm171_vm0, %v2038_v0 }
  0x20   : > { %193 = vst.msk [vmem:[#allocation2 + $0x180] sm:$0xff] %vm171_vm0, %v2038_v0 }
  0x21   : > { %194 = vst.msk [vmem:[#allocation2 + $0x1a0] sm:$0xff] %vm171_vm0, %v2038_v0 }
  0x22   : > { %195 = vst.msk [vmem:[#allocation2 + $0x1c0] sm:$0xff] %vm171_vm0, %v2038_v0 }
  0x23   : > { %196 = vst.msk [vmem:[#allocation2 + $0x1e0] sm:$0xff] %vm171_vm0, %v2038_v0 }
  0x24   : > { %197 = vst.msk [vmem:[#allocation2 + $0x200] sm:$0xff] %vm171_vm0, %v2038_v0 }
  0x25   : > { %198 = vst.msk [vmem:[#allocation2 + $0x38] sm:$0xff] %vm171_vm0, %v2038_v0 }
  0x26   : > { %199 = vst.msk [vmem:[#allocation2 + $0x58] sm:$0xff] %vm171_vm0, %v2038_v0 }
  0x27   : > { %200 = vst.msk [vmem:[#allocation2 + $0x78] sm:$0xff] %vm171_vm0, %v2038_v0 }
  0x28   : > { %201 = vst.msk [vmem:[#allocation2 + $0x98] sm:$0xff] %vm171_vm0, %v2038_v0 }
  0x29   : > { %202 = vst.msk [vmem:[#allocation2 + $0xb8] sm:$0xff] %vm171_vm0, %v2038_v0 }
  0x2a   : > { %203 = vst.msk [vmem:[#allocation2 + $0xd8] sm:$0xff] %vm171_vm0, %v2038_v0 }
  0x2b   : > { %204 = vst.msk [vmem:[#allocation2 + $0xf8] sm:$0xff] %vm171_vm0, %v2038_v0 }
  0x2c   : > { %205 = vst.msk [vmem:[#allocation2 + $0x118] sm:$0xff] %vm171_vm0, %v2038_v0 }
  0x2d   : > { %206 = vst.msk [vmem:[#allocation2 + $0x138] sm:$0xff] %vm171_vm0, %v2038_v0 }
  0x2e   : > { %207 = vst.msk [vmem:[#allocation2 + $0x158] sm:$0xff] %vm171_vm0, %v2038_v0 }
  0x2f   : > { %208 = vst.msk [vmem:[#allocation2 + $0x178] sm:$0xff] %vm171_vm0, %v2038_v0 }
  0x30   : > { %209 = vst.msk [vmem:[#allocation2 + $0x198] sm:$0xff] %vm171_vm0, %v2038_v0 }
  0x31   : > { %210 = vst.msk [vmem:[#allocation2 + $0x1b8] sm:$0xff] %vm171_vm0, %v2038_v0 }
  0x32   : > { %211 = vst.msk [vmem:[#allocation2 + $0x1d8] sm:$0xff] %vm171_vm0, %v2038_v0 }
  0x33   : > { %212 = vst.msk [vmem:[#allocation2 + $0x1f8] sm:$0xff] %vm171_vm0, %v2038_v0 }
  0x34   : > { %213 = vst.msk [vmem:[#allocation2 + $0x218] sm:$0xff] %vm171_vm0, %v2038_v0 }
  0x35   : > { %246 = vst.msk [vmem:[#allocation2 + $0x28] sm:$0xff] %vm171_vm0, %v214_v2 }
  0x36   : > { %247 = vst.msk [vmem:[#allocation2 + $0x30] sm:$0xff] %vm171_vm0, %v215_v3 }
  0x37   : > { %248 = vst.msk [vmem:[#allocation2 + $0x48] sm:$0xff] %vm171_vm0, %v216_v4 }
  0x38   : > { %249 = vst.msk [vmem:[#allocation2 + $0x50] sm:$0xff] %vm171_vm0, %v217_v5 }
  0x39   : > { %250 = vst.msk [vmem:[#allocation2 + $0x68] sm:$0xff] %vm171_vm0, %v218_v6 }
  0x3a   : > { %251 = vst.msk [vmem:[#allocation2 + $0x70] sm:$0xff] %vm171_vm0, %v219_v7 }
  0x3b   : > { %252 = vst.msk [vmem:[#allocation2 + $0x88] sm:$0xff] %vm171_vm0, %v220_v8 }
  0x3c   : > { %253 = vst.msk [vmem:[#allocation2 + $0x90] sm:$0xff] %vm171_vm0, %v221_v9 }
  0x3d   : > { %254 = vst.msk [vmem:[#allocation2 + $0xa8] sm:$0xff] %vm171_vm0, %v222_v10 }
  0x3e   : > { %255 = vst.msk [vmem:[#allocation2 + $0xb0] sm:$0xff] %vm171_vm0, %v223_v11 }
  0x3f   : > { %256 = vst.msk [vmem:[#allocation2 + $0xc8] sm:$0xff] %vm171_vm0, %v224_v12 }
  0x40   : > { %257 = vst.msk [vmem:[#allocation2 + $0xd0] sm:$0xff] %vm171_vm0, %v225_v13 }
  0x41   : > { %258 = vst.msk [vmem:[#allocation2 + $0xe8] sm:$0xff] %vm171_vm0, %v226_v14 }
  0x42   : > { %259 = vst.msk [vmem:[#allocation2 + $0xf0] sm:$0xff] %vm171_vm0, %v227_v15 }
  0x43   : > { %260 = vst.msk [vmem:[#allocation2 + $0x108] sm:$0xff] %vm171_vm0, %v228_v16 }
  0x44   : > { %261 = vst.msk [vmem:[#allocation2 + $0x110] sm:$0xff] %vm171_vm0, %v229_v17 }
  0x45   : > { %262 = vst.msk [vmem:[#allocation2 + $0x128] sm:$0xff] %vm171_vm0, %v230_v18 }
  0x46   : > { %263 = vst.msk [vmem:[#allocation2 + $0x130] sm:$0xff] %vm171_vm0, %v231_v19 }
  0x47   : > { %264 = vst.msk [vmem:[#allocation2 + $0x148] sm:$0xff] %vm171_vm0, %v232_v20 }
  0x48   : > { %265 = vst.msk [vmem:[#allocation2 + $0x150] sm:$0xff] %vm171_vm0, %v233_v21 }
  0x49   : > { %266 = vst.msk [vmem:[#allocation2 + $0x168] sm:$0xff] %vm171_vm0, %v234_v22 }
  0x4a   : > { %267 = vst.msk [vmem:[#allocation2 + $0x170] sm:$0xff] %vm171_vm0, %v235_v23 }
  0x4b   : > { %268 = vst.msk [vmem:[#allocation2 + $0x188] sm:$0xff] %vm171_vm0, %v236_v24 }
  0x4c   : > { %269 = vst.msk [vmem:[#allocation2 + $0x190] sm:$0xff] %vm171_vm0, %v237_v25 }
  0x4d   : > { %270 = vst.msk [vmem:[#allocation2 + $0x1a8] sm:$0xff] %vm171_vm0, %v238_v26 }
  0x4e   : > { %271 = vst.msk [vmem:[#allocation2 + $0x1b0] sm:$0xff] %vm171_vm0, %v239_v27 }
  0x4f   : > { %272 = vst.msk [vmem:[#allocation2 + $0x1c8] sm:$0xff] %vm171_vm0, %v240_v28 }
  0x50   : > { %273 = vst.msk [vmem:[#allocation2 + $0x1d0] sm:$0xff] %vm171_vm0, %v241_v29 }
  0x51   : > { %274 = vst.msk [vmem:[#allocation2 + $0x1e8] sm:$0xff] %vm171_vm0, %v242_v30 }
  0x52   : > { %275 = vst.msk [vmem:[#allocation2 + $0x1f0] sm:$0xff] %vm171_vm0, %v243_v31 }
  0x53   : > { %276 = vst.msk [vmem:[#allocation2 + $0x208] sm:$0xff] %vm171_vm0, %v244_v32 }
  0x54   : > { %277 = vst.msk [vmem:[#allocation2 + $0x210] sm:$0xff] %vm171_vm0, %v245_v33 }
  0x55 LB: >> { %v1733_v34 = vld [vmem:[%s2794_s1 + $0x4] sm:$0xf]  ;;  %vm371_vm1 = vcmask 1043456   ;;  %v1768_v35 = vld [vmem:[%s2794_s1 + $0x8] sm:$0xf]  ;;  %s1999_s5 = sshll.u32 %s2036_s23, 8  ;;  %s2036_s23 = sphi %s2193_s23, %s284_s23  }
  0x56   : >> { %2002 = vmatpush.msk.msra.mxu1 %vm371_vm1, %v1733_v34  ;;  %2003 = vmatpush.msk.msra.mxu2 %vm371_vm1, %v1733_v34  ;;  %v1804_v36 = vld [vmem:[%s2794_s1 + $0xc] sm:$0xf]  ;;  %v304_v37 = vld [vmem:[%s2794_s1] sm:$0xf]  ;;  %v1838_v38 = vld [vmem:[%s2794_s1 + $0x10] sm:$0xf] }
  0x57   : >> { %2004 = vmatpush.msk.msra.mxu3 %vm371_vm1, %v1733_v34  ;;  %s2220_s8 = scalar_lea.vmem [#allocation2], %s1999_s5  ;;  %1734 = vmatpush.msk.msra.mxu0 %vm371_vm1, %v1733_v34  ;;  %v1908_v43 = vld [vmem:[%s2794_s1 + $0x18] sm:$0xf]  ;;  %v1942_v46 = vld [vmem:[%s2794_s1 + $0x1c] sm:$0xf]  ;;  %s1994_s19 = sshll.u32 %s2036_s23, 7 }
  0x58   : >> { %1769 = vmatpush.msk.msrb.mxu2 %vm371_vm1, %v1768_v35  ;;  %1751 = vmatpush.msk.msrb.mxu1 %vm371_vm1, %v304_v37  ;;  %v1872_v49 = vld [vmem:[%s2794_s1 + $0x14] sm:$0xf]  ;;  %v1976_v50 = vld [vmem:[%s2794_s1 + $0x20] sm:$0xf]  ;;  %s2722_s20 = scalar_lea.vmem %s2080_s17, %s1994_s19  ;;  %vm1633_vm2 = vcmask 64512   ;;  %s284_s23 = sadd.s32 1, %s2036_s23  }
  0x59   : >> { %1805 = vmatpush.msk.msrb.mxu3 %vm371_vm1, %v1804_v36  ;;  %1839 = vmatpush.msk.msrb.mxu0 %vm371_vm1, %v1838_v38  ;;  %p281_p4 = scmp.ge.s32.totalorder %s284_s23, 2  }
  0x5b   : >> { %v2223_v39 = vld [vmem:[%s2220_s8 + $0x48] sm:$0xff]  ;;  %v2245_v44 = vld [vmem:[%s2220_s8 + $0x50] sm:$0xff] }
  0x5c   : >> { %v2226_v40 = vld [vmem:[%s2220_s8 + $0x88] sm:$0xff]  ;;  %1739 = vmatmul.msk.f32.vlgmr.msra.gmra.mxu1 %vm171_vm0, %v2223_v39  ;;  %v2248_v45 = vld [vmem:[%s2220_s8 + $0x90] sm:$0xff] }
  0x5d   : >> { %v2229_v41 = vld [vmem:[%s2220_s8 + $0xc8] sm:$0xff]  ;;  %1743 = vmatmul.msk.f32.vlgmr.msra.gmra.mxu2 %vm171_vm0, %v2226_v40  ;;  %v2255_v47 = vld [vmem:[%s2220_s8 + $0xd0] sm:$0xff]  ;;  %1873 = vmatpush.msk.msra.mxu1 %vm371_vm1, %v1872_v49 }
  0x5e   : >> { %v305_v42 = vld [vmem:[%s2220_s8 + $0x8] sm:$0xff]  ;;  %1747 = vmatmul.msk.f32.vlgmr.msra.gmra.mxu3 %vm171_vm0, %v2229_v41  ;;  %1909 = vmatpush.msk.msra.mxu2 %vm371_vm1, %v1908_v43  ;;  %v306_v48 = vld [vmem:[%s2220_s8 + $0x10] sm:$0xff] }
  0x5f   : >> { %1735 = vmatmul.msk.f32.vlgmr.msra.gmra.mxu0 %vm171_vm0, %v305_v42  ;;  %1943 = vmatpush.msk.msra.mxu3 %vm371_vm1, %v1942_v46  ;;  %v2275_v51 = vld [vmem:[%s2220_s8 + $0x68] sm:$0xff]  ;;  %v2292_v55 = vld [vmem:[%s2220_s8 + $0x70] sm:$0xff] }
  0x60   : >> { %1977 = vmatpush.msk.msra.mxu0 %vm371_vm1, %v1976_v50  ;;  %v2278_v52 = vld [vmem:[%s2220_s8 + $0xa8] sm:$0xff]  ;;  %v2295_v56 = vld [vmem:[%s2220_s8 + $0xb0] sm:$0xff] }
  0x61   : >> { %v2281_v53 = vld [vmem:[%s2220_s8 + $0xe8] sm:$0xff]  ;;  %v2298_v57 = vld [vmem:[%s2220_s8 + $0xf0] sm:$0xff] }
  0x62   : >> { %v307_v54 = vld [vmem:[%s2220_s8 + $0x28] sm:$0xff]  ;;  %v308_v58 = vld [vmem:[%s2220_s8 + $0x30] sm:$0xff] }
  0x63   : >> { %v288_v59 = vld [vmem:[%s2220_s8 + $0x7] sm:$0xff]  ;;  %v289_v62 = vld [vmem:[%s2220_s8 + $0xf] sm:$0xff] }
  0x64   : >> { %1740 = vmatmul.msk.f32.gmra.mxu1 %vm171_vm0, %v2245_v44  ;;  %v556_v60 = vld [vmem:[%s2220_s8 + $0x9] sm:$0xff]  ;;  %v557_v63 = vld [vmem:[%s2220_s8 + $0x11] sm:$0xff] }
  0x65   : >> { %1744 = vmatmul.msk.f32.gmra.mxu2 %vm171_vm0, %v2248_v45  ;;  %v1788_v61 = vld [vmem:[%s2220_s8 + $0x27] sm:$0xff]  ;;  %v1789_v0 = vld [vmem:[%s2220_s8 + $0x2f] sm:$0xff] }
  0x66   : >> { %1748 = vmatmul.msk.f32.gmra.mxu3 %vm171_vm0, %v2255_v47  ;;  %v2323_v2 = vld [vmem:[%s2220_s8 + $0x29] sm:$0xff]  ;;  %v2336_v4 = vld [vmem:[%s2220_s8 + $0x31] sm:$0xff] }
  0x67   : >> { %1736 = vmatmul.msk.f32.gmra.mxu0 %vm171_vm0, %v306_v48  ;;  %v2326_v3 = vld [vmem:[%s2220_s8 + $0x47] sm:$0xff]  ;;  %v2339_v5 = vld [vmem:[%s2220_s8 + $0x4f] sm:$0xff] }
  0x68   : >> { %v2349_v6 = vld [vmem:[%s2220_s8 + $0x49] sm:$0xff]  ;;  %v2363_v8 = vld [vmem:[%s2220_s8 + $0x51] sm:$0xff] }
  0x69   : >> { %v2352_v7 = vld [vmem:[%s2220_s8 + $0x67] sm:$0xff]  ;;  %v2366_v9 = vld [vmem:[%s2220_s8 + $0x6f] sm:$0xff] }
  0x6a   : >> { %v2377_v10 = vld [vmem:[%s2220_s8 + $0x69] sm:$0xff]  ;;  %v2391_v12 = vld [vmem:[%s2220_s8 + $0x71] sm:$0xff] }
  0x6b   : >> { %v2380_v11 = vld [vmem:[%s2220_s8 + $0x87] sm:$0xff]  ;;  %v2394_v13 = vld [vmem:[%s2220_s8 + $0x8f] sm:$0xff] }
  0x6c   : >> { %1741 = vmatmul.msk.f32.gmra.mxu1 %vm171_vm0, %v2275_v51  ;;  %v2405_v14 = vld [vmem:[%s2220_s8 + $0x89] sm:$0xff]  ;;  %v2419_v16 = vld [vmem:[%s2220_s8 + $0x91] sm:$0xff] }
  0x6d   : >> { %1745 = vmatmul.msk.f32.gmra.mxu2 %vm171_vm0, %v2278_v52  ;;  %v2408_v15 = vld [vmem:[%s2220_s8 + $0xa7] sm:$0xff]  ;;  %v2422_v17 = vld [vmem:[%s2220_s8 + $0xaf] sm:$0xff] }
  0x6e   : >> { %1749 = vmatmul.msk.f32.gmra.mxu3 %vm171_vm0, %v2281_v53  ;;  %v2433_v18 = vld [vmem:[%s2220_s8 + $0xa9] sm:$0xff]  ;;  %v2447_v20 = vld [vmem:[%s2220_s8 + $0xb1] sm:$0xff] }
  0x6f   : >> { %1737 = vmatmul.msk.f32.gmra.mxu0 %vm171_vm0, %v307_v54  ;;  %v2436_v19 = vld [vmem:[%s2220_s8 + $0xc7] sm:$0xff]  ;;  %v2450_v21 = vld [vmem:[%s2220_s8 + $0xcf] sm:$0xff] }
  0x70   : >> { %v2463_v23 = vld [vmem:[%s2220_s8 + $0xc9] sm:$0xff]  ;;  %v2483_v29 = vld [vmem:[%s2220_s8 + $0xd1] sm:$0xff] }
  0x71   : >> { %v2466_v24 = vld [vmem:[%s2220_s8 + $0xe7] sm:$0xff]  ;;  %v2486_v30 = vld [vmem:[%s2220_s8 + $0xef] sm:$0xff] }
  0x72   : >> { %v2503_v35 = vld [vmem:[%s2220_s8 + $0xe9] sm:$0xff]  ;;  %v2526_v48 = vld [vmem:[%s2220_s8 + $0xf1] sm:$0xff] }
  0x73   : >> { %v2506_v36 = vld [vmem:[%s2220_s8 + $0x107] sm:$0xff]  ;;  %v2529_v49 = vld [vmem:[%s2220_s8 + $0x10f] sm:$0xff] }
  0x74   : >> { %1742 = vmatmul.msk.f32.gmra.mxu1 %vm171_vm0, %v2292_v55  ;;  %v2509_v38 = vld [vmem:[%s2220_s8 + $0x108] sm:$0xff] }
  0x75   : >> { %1746 = vmatmul.msk.f32.gmra.mxu2 %vm171_vm0, %v2295_v56 }
  0x76   : >> { %1750 = vmatmul.msk.f32.gmra.mxu3 %vm171_vm0, %v2298_v57 }
  0x77   : >> { %1738 = vmatmul.msk.f32.gmra.mxu0 %vm171_vm0, %v308_v58 }
  0x7c   : >> { %1752 = vmatmul.msk.f32.vlgmr.msrb.gmra.mxu1 %vm171_vm0, %v288_v59 }
  0x7d   : >> { %1770 = vmatmul.msk.f32.vlgmr.msrb.gmra.mxu2 %vm171_vm0, %v556_v60 }
  0x7e   : >> { %1806 = vmatmul.msk.f32.vlgmr.msrb.gmra.mxu3 %vm171_vm0, %v1788_v61 }
  0x7f   : >> { %1840 = vmatmul.msk.f32.vlgmr.msrb.gmra.mxu0 %vm171_vm0, %v307_v54  ;;  %v2532_v54 = vld [vmem:[%s2220_s8 + $0x110] sm:$0xff] }
  0x80   : >> { %2801 = vst [vmem:[#allocation6_spill] sm:$0xff] %v2532_v54 }
  0x84   : >> { %1753 = vmatmul.msk.f32.gmra.mxu1 %vm171_vm0, %v289_v62 }
  0x85   : >> { %1771 = vmatmul.msk.f32.gmra.mxu2 %vm171_vm0, %v557_v63 }
  0x86   : >> { %1807 = vmatmul.msk.f32.gmra.mxu3 %vm171_vm0, %v1789_v0 }
  0x87   : >> { %1841 = vmatmul.msk.f32.gmra.mxu0 %vm171_vm0, %v308_v58 }
  0x8c   : >> { %1754 = vmatmul.msk.f32.gmra.mxu1 %vm171_vm0, %v1788_v61 }
  0x8d   : >> { %1772 = vmatmul.msk.f32.gmra.mxu2 %vm171_vm0, %v2323_v2 }
  0x8e   : >> { %1808 = vmatmul.msk.f32.gmra.mxu3 %vm171_vm0, %v2326_v3 }
  0x8f   : >> { %1842 = vmatmul.msk.f32.gmra.mxu0 %vm171_vm0, %v2223_v39 }
  0x94   : >> { %1755 = vmatmul.msk.f32.gmra.mxu1 %vm171_vm0, %v1789_v0 }
  0x95   : >> { %1773 = vmatmul.msk.f32.gmra.mxu2 %vm171_vm0, %v2336_v4 }
  0x96   : >> { %1809 = vmatmul.msk.f32.gmra.mxu3 %vm171_vm0, %v2339_v5 }
  0x97   : >> { %1843 = vmatmul.msk.f32.gmra.mxu0 %vm171_vm0, %v2245_v44 }
  0x9c   : >> { %1756 = vmatmul.msk.f32.gmra.mxu1 %vm171_vm0, %v2326_v3 }
  0x9d   : >> { %1774 = vmatmul.msk.f32.gmra.mxu2 %vm171_vm0, %v2349_v6 }
  0x9e   : >> { %1810 = vmatmul.msk.f32.gmra.mxu3 %vm171_vm0, %v2352_v7 }
  0x9f   : >> { %1844 = vmatmul.msk.f32.gmra.mxu0 %vm171_vm0, %v2275_v51 }
  0xa4   : >> { %1757 = vmatmul.msk.f32.gmra.mxu1 %vm171_vm0, %v2339_v5 }
  0xa5   : >> { %1775 = vmatmul.msk.f32.gmra.mxu2 %vm171_vm0, %v2363_v8 }
  0xa6   : >> { %1811 = vmatmul.msk.f32.gmra.mxu3 %vm171_vm0, %v2366_v9 }
  0xa7   : >> { %1845 = vmatmul.msk.f32.gmra.mxu0 %vm171_vm0, %v2292_v55 }
  0xac   : >> { %1758 = vmatmul.msk.f32.gmra.mxu1 %vm171_vm0, %v2352_v7 }
  0xad   : >> { %1776 = vmatmul.msk.f32.gmra.mxu2 %vm171_vm0, %v2377_v10 }
  0xae   : >> { %1812 = vmatmul.msk.f32.gmra.mxu3 %vm171_vm0, %v2380_v11 }
  0xaf   : >> { %1846 = vmatmul.msk.f32.gmra.mxu0 %vm171_vm0, %v2226_v40 }
  0xb4   : >> { %1759 = vmatmul.msk.f32.gmra.mxu1 %vm171_vm0, %v2366_v9 }
  0xb5   : >> { %1777 = vmatmul.msk.f32.gmra.mxu2 %vm171_vm0, %v2391_v12 }
  0xb6   : >> { %1813 = vmatmul.msk.f32.gmra.mxu3 %vm171_vm0, %v2394_v13 }
  0xb7   : >> { %1847 = vmatmul.msk.f32.gmra.mxu0 %vm171_vm0, %v2248_v45 }
  0xbc   : >> { %1760 = vmatmul.msk.f32.gmra.mxu1 %vm171_vm0, %v2380_v11 }
  0xbd   : >> { %1778 = vmatmul.msk.f32.gmra.mxu2 %vm171_vm0, %v2405_v14 }
  0xbe   : >> { %1814 = vmatmul.msk.f32.gmra.mxu3 %vm171_vm0, %v2408_v15 }
  0xbf   : >> { %1848 = vmatmul.msk.f32.gmra.mxu0 %vm171_vm0, %v2278_v52 }
  0xc4   : >> { %1761 = vmatmul.msk.f32.gmra.mxu1 %vm171_vm0, %v2394_v13 }
  0xc5   : >> { %1779 = vmatmul.msk.f32.gmra.mxu2 %vm171_vm0, %v2419_v16 }
  0xc6   : >> { %1815 = vmatmul.msk.f32.gmra.mxu3 %vm171_vm0, %v2422_v17 }
  0xc7   : >> { %1849 = vmatmul.msk.f32.gmra.mxu0 %vm171_vm0, %v2295_v56 }
  0xcc   : >> { %1762 = vmatmul.msk.f32.gmra.mxu1 %vm171_vm0, %v2408_v15 }
  0xcd   : >> { %1780 = vmatmul.msk.f32.gmra.mxu2 %vm171_vm0, %v2433_v18 }
  0xce   : >> { %1816 = vmatmul.msk.f32.gmra.mxu3 %vm171_vm0, %v2436_v19 }
  0xcf   : >> { %1850 = vmatmul.msk.f32.gmra.mxu0 %vm171_vm0, %v2229_v41 }
  0xd4   : >> { %1763 = vmatmul.msk.f32.gmra.mxu1 %vm171_vm0, %v2422_v17 }
  0xd5   : >> { %1781 = vmatmul.msk.f32.gmra.mxu2 %vm171_vm0, %v2447_v20 }
  0xd6   : >> { %1817 = vmatmul.msk.f32.gmra.mxu3 %vm171_vm0, %v2450_v21 }
  0xd7   : >> { %1851 = vmatmul.msk.f32.gmra.mxu0 %vm171_vm0, %v2255_v47 }
  0xd9   : >> { %v2460_v22 = vpop.f32.mrf.mxu1 }
  0xdc   : >> { %v392_v25 = vpop.f32.mrf.mxu0  ;;  %1764 = vmatmul.msk.f32.gmra.mxu1 %vm171_vm0, %v2436_v19 }
  0xdd   : >> { %1782 = vmatmul.msk.f32.gmra.mxu2 %vm171_vm0, %v2463_v23 }
  0xde   : >> { %1818 = vmatmul.msk.f32.gmra.mxu3 %vm171_vm0, %v2466_v24 }
  0xdf   : >> { %1852 = vmatmul.msk.f32.gmra.mxu0 %vm171_vm0, %v2281_v53 }
  0xe0   : >> { %v2476_v26 = vpop.f32.mrf.mxu2 }
  0xe1   : >> { %v2478_v27 = vpop.f32.mrf.mxu3  ;;  %v2480_v28 = vpop.f32.mrf.mxu1 }
  0xe4   : >> { %v395_v31 = vpop.f32.mrf.mxu0  ;;  %1765 = vmatmul.msk.f32.gmra.mxu1 %vm171_vm0, %v2450_v21 }
  0xe5   : >> { %1783 = vmatmul.msk.f32.gmra.mxu2 %vm171_vm0, %v2483_v29 }
  0xe6   : >> { %1819 = vmatmul.msk.f32.gmra.mxu3 %vm171_vm0, %v2486_v30 }
  0xe7   : >> { %1853 = vmatmul.msk.f32.gmra.mxu0 %vm171_vm0, %v2298_v57 }
  0xe8   : >> { %v2496_v32 = vpop.f32.mrf.mxu2 }
  0xe9   : >> { %v2498_v33 = vpop.f32.mrf.mxu3  ;;  %v2500_v34 = vpop.f32.mrf.mxu1 }
  0xea   : >> { %2799 = vst [vmem:[#allocation4_spill] sm:$0xff] %v2498_v33 }
  0xec   : >> { %v398_v37 = vpop.f32.mrf.mxu0  ;;  %1766 = vmatmul.msk.f32.gmra.mxu1 %vm171_vm0, %v2466_v24 }
  0xed   : >> { %1784 = vmatmul.msk.f32.gmra.mxu2 %vm171_vm0, %v2503_v35 }
  0xee   : >> { %1820 = vmatmul.msk.f32.gmra.mxu3 %vm171_vm0, %v2506_v36 }
  0xef   : >> { %1854 = vmatmul.msk.f32.gmra.mxu0 %vm171_vm0, %v2509_v38 }
  0xf0   : >> { %v2519_v42 = vpop.f32.mrf.mxu2 }
  0xf1   : >> { %v2521_v43 = vpop.f32.mrf.mxu3  ;;  %v2523_v46 = vpop.f32.mrf.mxu1 }
  0xf2   : >> { %2800 = vst [vmem:[#allocation5_spill] sm:$0xff] %v2521_v43 }
  0xf4   : >> { %v401_v50 = vpop.f32.mrf.mxu0  ;;  %1767 = vmatmul.msk.f32.gmra.mxu1 %vm171_vm0, %v2486_v30 }
  0xf5   : >> { %1785 = vmatmul.msk.f32.gmra.mxu2 %vm171_vm0, %v2526_v48 }
  0xf6   : >> { %1821 = vmatmul.msk.f32.gmra.mxu3 %vm171_vm0, %v2529_v49 }
  0xf7   : >> { %1855 = vmatmul.msk.f32.gmra.mxu0 %vm171_vm0, %v2532_v54 }
  0xf8   : >> { %v2542_v58 = vpop.f32.mrf.mxu2 }
  0xf9   : >> { %v2544_v59 = vpop.f32.mrf.mxu3  ;;  %v508_v60 = vpop.f32.mrf.mxu1 }
  0xfa   : >> { %2802 = vst [vmem:[#allocation7_spill] sm:$0xff] %v2544_v59  ;;  %v509_v62 = vadd.f32 %v508_v60, %v392_v25 }
  0xfc   : >> { %v945_v61 = vpop.f32.mrf.mxu0  ;;  %1874 = vmatmul.msk.f32.vlgmr.msra.gmra.mxu1 %vm171_vm0, %v2323_v2 }
  0xfd   : >> { %1910 = vmatmul.msk.f32.vlgmr.msra.gmra.mxu2 %vm171_vm0, %v2326_v3 }
  0xfe   : >> { %1944 = vmatmul.msk.f32.vlgmr.msra.gmra.mxu3 %vm171_vm0, %v2223_v39 }
  0xff   : >> { %1978 = vmatmul.msk.f32.vlgmr.msra.gmra.mxu0 %vm171_vm0, %v2349_v6 }
 0x100   : >> { %v642_v63 = vpop.f32.mrf.mxu2 }
 0x101   : >> { %v690_v0 = vadd.f32 %v642_v63, %v509_v62  ;;  %v795_v1 = vpop.f32.mrf.mxu3  ;;  %v511_v43 = vpop.f32.mrf.mxu1 }
 0x102   : >> { %v512_v39 = vadd.f32 %v511_v43, %v395_v31 }
 0x103   : >> { %v843_v59 = vadd.f32 %v795_v1, %v690_v0 }
 0x104   : >> { %v948_v33 = vpop.f32.mrf.mxu0  ;;  %1875 = vmatmul.msk.f32.gmra.mxu1 %vm171_vm0, %v2336_v4 }
 0x105   : >> { %v2554_v54 = vadd.f32 %v945_v61, %v843_v59  ;;  %1911 = vmatmul.msk.f32.gmra.mxu2 %vm171_vm0, %v2339_v5 }
 0x106   : >> { %1945 = vmatmul.msk.f32.gmra.mxu3 %vm171_vm0, %v2245_v44 }
 0x107   : >> { %1979 = vmatmul.msk.f32.gmra.mxu0 %vm171_vm0, %v2363_v8 }
 0x108   : >> { %v645_v2 = vpop.f32.mrf.mxu2 }
 0x109   : >> { %v691_v3 = vadd.f32 %v645_v2, %v512_v39  ;;  %v798_v25 = vpop.f32.mrf.mxu3  ;;  %v514_v1 = vpop.f32.mrf.mxu1 }
 0x10a   : >> { %v515_v44 = vadd.f32 %v514_v1, %v398_v37 }
 0x10b   : >> { %v844_v60 = vadd.f32 %v798_v25, %v691_v3 }
 0x10c   : >> { %v951_v59 = vpop.f32.mrf.mxu0  ;;  %1876 = vmatmul.msk.f32.gmra.mxu1 %vm171_vm0, %v2349_v6 }
 0x10d   : >> { %v2564_v61 = vadd.f32 %v948_v33, %v844_v60  ;;  %1912 = vmatmul.msk.f32.gmra.mxu2 %vm171_vm0, %v2352_v7 }
 0x10e   : >> { %1946 = vmatmul.msk.f32.gmra.mxu3 %vm171_vm0, %v2275_v51 }
 0x10f   : >> { %1980 = vmatmul.msk.f32.gmra.mxu0 %vm171_vm0, %v2377_v10 }
 0x110   : >> { %v648_v4 = vpop.f32.mrf.mxu2 }
 0x111   : >> { %v692_v5 = vadd.f32 %v648_v4, %v515_v44  ;;  %v801_v31 = vpop.f32.mrf.mxu3  ;;  %v517_v43 = vpop.f32.mrf.mxu1 }
 0x112   : >> { %v518_v51 = vadd.f32 %v517_v43, %v401_v50 }
 0x113   : >> { %v845_v62 = vadd.f32 %v801_v31, %v692_v5 }
 0x114   : >> { %v954_v33 = vpop.f32.mrf.mxu0  ;;  %1877 = vmatmul.msk.f32.gmra.mxu1 %vm171_vm0, %v2363_v8 }
 0x115   : >> { %v2574_v63 = vadd.f32 %v951_v59, %v845_v62  ;;  %1913 = vmatmul.msk.f32.gmra.mxu2 %vm171_vm0, %v2366_v9 }
 0x116   : >> { %1947 = vmatmul.msk.f32.gmra.mxu3 %vm171_vm0, %v2292_v55 }
 0x117   : >> { %1981 = vmatmul.msk.f32.gmra.mxu0 %vm171_vm0, %v2391_v12 }
 0x118   : >> { %v651_v6 = vpop.f32.mrf.mxu2 }
 0x119   : >> { %v693_v7 = vadd.f32 %v651_v6, %v518_v51  ;;  %v804_v37 = vpop.f32.mrf.mxu3  ;;  %v520_v0 = vpop.f32.mrf.mxu1 }
 0x11a   : >> { %v521_v55 = vadd.f32 %v520_v0, %v2460_v22 }
 0x11b   : >> { %v846_v39 = vadd.f32 %v804_v37, %v693_v7 }
 0x11c   : >> { %v957_v2 = vpop.f32.mrf.mxu0  ;;  %1878 = vmatmul.msk.f32.gmra.mxu1 %vm171_vm0, %v2377_v10 }
 0x11d   : >> { %v2584_v3 = vadd.f32 %v954_v33, %v846_v39  ;;  %1914 = vmatmul.msk.f32.gmra.mxu2 %vm171_vm0, %v2380_v11 }
 0x11e   : >> { %1948 = vmatmul.msk.f32.gmra.mxu3 %vm171_vm0, %v2226_v40 }
 0x11f   : >> { %1982 = vmatmul.msk.f32.gmra.mxu0 %vm171_vm0, %v2405_v14 }
 0x120   : >> { %v654_v8 = vpop.f32.mrf.mxu2 }
 0x121   : >> { %v694_v9 = vadd.f32 %v654_v8, %v521_v55  ;;  %v807_v50 = vpop.f32.mrf.mxu3  ;;  %v523_v25 = vpop.f32.mrf.mxu1 }
 0x122   : >> { %v524_v40 = vadd.f32 %v523_v25, %v2480_v28 }
 0x123   : >> { %v847_v1 = vadd.f32 %v807_v50, %v694_v9 }
 0x124   : >> { %v960_v60 = vpop.f32.mrf.mxu0  ;;  %1879 = vmatmul.msk.f32.gmra.mxu1 %vm171_vm0, %v2391_v12 }
 0x125   : >> { %v2595_v59 = vadd.f32 %v957_v2, %v847_v1  ;;  %1915 = vmatmul.msk.f32.gmra.mxu2 %vm171_vm0, %v2394_v13 }
 0x126   : >> { %1949 = vmatmul.msk.f32.gmra.mxu3 %vm171_vm0, %v2248_v45 }
 0x127   : >> { %1983 = vmatmul.msk.f32.gmra.mxu0 %vm171_vm0, %v2419_v16 }
 0x128   : >> { %v657_v10 = vpop.f32.mrf.mxu2 }
 0x129   : >> { %v695_v11 = vadd.f32 %v657_v10, %v524_v40  ;;  %v810_v22 = vpop.f32.mrf.mxu3  ;;  %v526_v44 = vpop.f32.mrf.mxu1 }
 0x12a   : >> { %v527_v45 = vadd.f32 %v526_v44, %v2500_v34 }
 0x12b   : >> { %v848_v4 = vadd.f32 %v810_v22, %v695_v11 }
 0x12c   : >> { %v963_v5 = vpop.f32.mrf.mxu0  ;;  %1880 = vmatmul.msk.f32.gmra.mxu1 %vm171_vm0, %v2405_v14 }
 0x12d   : >> { %v2606_v31 = vadd.f32 %v960_v60, %v848_v4  ;;  %1916 = vmatmul.msk.f32.gmra.mxu2 %vm171_vm0, %v2408_v15 }
 0x12e   : >> { %1950 = vmatmul.msk.f32.gmra.mxu3 %vm171_vm0, %v2278_v52 }
 0x12f   : >> { %1984 = vmatmul.msk.f32.gmra.mxu0 %vm171_vm0, %v2433_v18 }
 0x130   : >> { %v660_v12 = vpop.f32.mrf.mxu2 }
 0x131   : >> { %v696_v13 = vadd.f32 %v660_v12, %v527_v45  ;;  %v813_v28 = vpop.f32.mrf.mxu3  ;;  %v529_v43 = vpop.f32.mrf.mxu1 }
 0x132   : >> { %v530_v52 = vadd.f32 %v529_v43, %v2523_v46 }
 0x133   : >> { %v849_v62 = vadd.f32 %v813_v28, %v696_v13 }
 0x134   : >> { %v966_v33 = vpop.f32.mrf.mxu0  ;;  %1881 = vmatmul.msk.f32.gmra.mxu1 %vm171_vm0, %v2419_v16 }
 0x135   : >> { %v2617_v51 = vadd.f32 %v963_v5, %v849_v62  ;;  %1917 = vmatmul.msk.f32.gmra.mxu2 %vm171_vm0, %v2422_v17  ;;  %v1972_v5 = vld [vmem:[%s2220_s8 + $0x109] sm:$0xff] }
 0x136   : >> { %1951 = vmatmul.msk.f32.gmra.mxu3 %vm171_vm0, %v2295_v56 }
 0x137   : >> { %1985 = vmatmul.msk.f32.gmra.mxu0 %vm171_vm0, %v2447_v20 }
 0x138   : >> { %v663_v14 = vpop.f32.mrf.mxu2 }
 0x139   : >> { %v697_v15 = vadd.f32 %v663_v14, %v530_v52  ;;  %v816_v34 = vpop.f32.mrf.mxu3  ;;  %v532_v6 = vpop.f32.mrf.mxu1 }
 0x13a   : >> { %v533_v56 = vadd.f32 %v532_v6, %v2476_v26  ;;  %v1940_v6 = vld [vmem:[%s2220_s8 + $0x128] sm:$0xff] }
 0x13b   : >> { %v850_v7 = vadd.f32 %v816_v34, %v697_v15  ;;  %v1906_v15 = vld [vmem:[%s2220_s8 + $0x127] sm:$0xff] }
 0x13c   : >> { %v969_v37 = vpop.f32.mrf.mxu0  ;;  %1882 = vmatmul.msk.f32.gmra.mxu1 %vm171_vm0, %v2433_v18 }
 0x13d   : >> { %v2628_v0 = vadd.f32 %v966_v33, %v850_v7  ;;  %1918 = vmatmul.msk.f32.gmra.mxu2 %vm171_vm0, %v2436_v19  ;;  %v1974_v7 = vld [vmem:[%s2220_s8 + $0x129] sm:$0xff] }
 0x13e   : >> { %1952 = vmatmul.msk.f32.gmra.mxu3 %vm171_vm0, %v2229_v41 }
 0x13f   : >> { %1986 = vmatmul.msk.f32.gmra.mxu0 %vm171_vm0, %v2463_v23 }
 0x140   : >> { %v666_v16 = vpop.f32.mrf.mxu2 }
 0x141   : >> { %v698_v17 = vadd.f32 %v666_v16, %v533_v56  ;;  %v819_v46 = vpop.f32.mrf.mxu3  ;;  %v535_v39 = vpop.f32.mrf.mxu1 }
 0x142   : >> { %v536_v41 = vadd.f32 %v535_v39, %v2496_v32 }
 0x143   : >> { %v851_v2 = vadd.f32 %v819_v46, %v698_v17 }
 0x144   : >> { %v972_v55 = vpop.f32.mrf.mxu0  ;;  %1883 = vmatmul.msk.f32.gmra.mxu1 %vm171_vm0, %v2447_v20 }
 0x145   : >> { %v2639_v8 = vadd.f32 %v969_v37, %v851_v2  ;;  %1919 = vmatmul.msk.f32.gmra.mxu2 %vm171_vm0, %v2450_v21  ;;  %v2805_v37 = vld [vmem:[#allocation5_spill] sm:$0xff] }
 0x146   : >> { %1953 = vmatmul.msk.f32.gmra.mxu3 %vm171_vm0, %v2255_v47  ;;  %v1907_v2 = vld [vmem:[%s2220_s8 + $0x12f] sm:$0xff] }
 0x147   : >> { %1987 = vmatmul.msk.f32.gmra.mxu0 %vm171_vm0, %v2483_v29 }
 0x148   : >> { %v669_v18 = vpop.f32.mrf.mxu2 }
 0x149   : >> { %v699_v19 = vadd.f32 %v669_v18, %v536_v41  ;;  %v822_v26 = vpop.f32.mrf.mxu3  ;;  %v538_v9 = vpop.f32.mrf.mxu1  ;;  %v1941_v41 = vld [vmem:[%s2220_s8 + $0x130] sm:$0xff] }
 0x14a   : >> { %v539_v47 = vadd.f32 %v538_v9, %v2519_v42  ;;  %v2806_v9 = vld [vmem:[#allocation7_spill] sm:$0xff] }
 0x14b   : >> { %v852_v50 = vadd.f32 %v822_v26, %v699_v19  ;;  %v1975_v19 = vld [vmem:[%s2220_s8 + $0x131] sm:$0xff] }
 0x14c   : >> { %v975_v25 = vpop.f32.mrf.mxu0  ;;  %1884 = vmatmul.msk.f32.gmra.mxu1 %vm171_vm0, %v2463_v23 }
 0x14d   : >> { %v2650_v1 = vadd.f32 %v972_v55, %v852_v50  ;;  %1920 = vmatmul.msk.f32.gmra.mxu2 %vm171_vm0, %v2466_v24 }
 0x14e   : >> { %1954 = vmatmul.msk.f32.gmra.mxu3 %vm171_vm0, %v2281_v53 }
 0x14f   : >> { %1988 = vmatmul.msk.f32.gmra.mxu0 %vm171_vm0, %v2503_v35 }
 0x150   : >> { %v672_v20 = vpop.f32.mrf.mxu2 }
 0x151   : >> { %v700_v21 = vadd.f32 %v672_v20, %v539_v47  ;;  %v825_v32 = vpop.f32.mrf.mxu3  ;;  %v541_v60 = vpop.f32.mrf.mxu1 }
 0x152   : >> { %v542_v53 = vadd.f32 %v541_v60, %v2542_v58 }
 0x153   : >> { %v853_v40 = vadd.f32 %v825_v32, %v700_v21 }
 0x154   : >> { %v978_v10 = vpop.f32.mrf.mxu0  ;;  %1885 = vmatmul.msk.f32.gmra.mxu1 %vm171_vm0, %v2483_v29 }
 0x155   : >> { %v2661_v11 = vadd.f32 %v975_v25, %v853_v40  ;;  %1921 = vmatmul.msk.f32.gmra.mxu2 %vm171_vm0, %v2486_v30 }
 0x156   : >> { %1955 = vmatmul.msk.f32.gmra.mxu3 %vm171_vm0, %v2298_v57 }
 0x157   : >> { %1989 = vmatmul.msk.f32.gmra.mxu0 %vm171_vm0, %v2526_v48 }
 0x158   : >> { %v675_v23 = vpop.f32.mrf.mxu2 }
 0x159   : >> { %v701_v24 = vadd.f32 %v675_v23, %v542_v53  ;;  %v828_v42 = vpop.f32.mrf.mxu3  ;;  %v544_v22 = vpop.f32.mrf.mxu1 }
 0x15a   : >> { %v545_v57 = vadd.f32 %v544_v22, %v2478_v27  ;;  %v2804_v27 = vld [vmem:[#allocation4_spill] sm:$0xff] }
 0x15b   : >> { %v854_v44 = vadd.f32 %v828_v42, %v701_v24 }
 0x15c   : >> { %v981_v4 = vpop.f32.mrf.mxu0  ;;  %1886 = vmatmul.msk.f32.gmra.mxu1 %vm171_vm0, %v2503_v35  ;;  %v1973_v35 = vld [vmem:[%s2220_s8 + $0x111] sm:$0xff] }
 0x15d   : >> { %v2673_v29 = vadd.f32 %v978_v10, %v854_v44  ;;  %1922 = vmatmul.msk.f32.gmra.mxu2 %vm171_vm0, %v2506_v36  ;;  %v2803_v36 = vld [vmem:[#allocation6_spill] sm:$0xff]  ;;  %v2807_v44 = vld [vmem:[#allocation3_spill] sm:$0xff] }
 0x15e   : >> { %1956 = vmatmul.msk.f32.gmra.mxu3 %vm171_vm0, %v2509_v38 }
 0x15f   : >> { %1990 = vmatmul.msk.f32.gmra.mxu0 %vm171_vm0, %v1972_v5 }
 0x160   : >> { %v678_v30 = vpop.f32.mrf.mxu2 }
 0x161   : >> { %v702_v58 = vadd.f32 %v678_v30, %v545_v57  ;;  %v831_v45 = vpop.f32.mrf.mxu3  ;;  %v547_v12 = vpop.f32.mrf.mxu1 }
 0x162   : >> { %v548_v38 = vadd.f32 %v547_v12, %v2804_v27 }
 0x163   : >> { %v855_v13 = vadd.f32 %v831_v45, %v702_v58 }
 0x164   : >> { %v984_v28 = vpop.f32.mrf.mxu0  ;;  %1887 = vmatmul.msk.f32.gmra.mxu1 %vm171_vm0, %v2526_v48 }
 0x165   : >> { %v2684_v43 = vadd.f32 %v981_v4, %v855_v13  ;;  %1923 = vmatmul.msk.f32.gmra.mxu2 %vm171_vm0, %v2529_v49  ;;  %v2718_v4 = vperm.slane %v2807_v44, 0 }
 0x166   : >> { %1957 = vmatmul.msk.f32.gmra.mxu3 %vm171_vm0, %v2803_v36 }
 0x167   : >> { %1991 = vmatmul.msk.f32.gmra.mxu0 %vm171_vm0, %v1973_v35 }
 0x168   : >> { %v681_v62 = vpop.f32.mrf.mxu2 }
 0x169   : >> { %v703_v33 = vadd.f32 %v681_v62, %v548_v38  ;;  %v834_v52 = vpop.f32.mrf.mxu3  ;;  %v550_v14 = vpop.f32.mrf.mxu1 }
 0x16a   : >> { %v551_v56 = vadd.f32 %v550_v14, %v2805_v37 }
 0x16b   : >> { %v856_v34 = vadd.f32 %v834_v52, %v703_v33 }
 0x16c   : >> { %v987_v48 = vpop.f32.mrf.mxu0  ;;  %1888 = vmatmul.msk.f32.gmra.mxu1 %vm171_vm0, %v1972_v5 }
 0x16d   : >> { %v2697_v49 = vadd.f32 %v984_v28, %v856_v34  ;;  %1924 = vmatmul.msk.f32.gmra.mxu2 %vm171_vm0, %v1906_v15 }
 0x16e   : >> { %1958 = vmatmul.msk.f32.gmra.mxu3 %vm171_vm0, %v1940_v6 }
 0x16f   : >> { %1992 = vmatmul.msk.f32.gmra.mxu0 %vm171_vm0, %v1974_v7 }
 0x170   : >> { %v684_v16 = vpop.f32.mrf.mxu2 }
 0x171   : >> { %v704_v17 = vadd.f32 %v684_v16, %v551_v56  ;;  %v837_v46 = vpop.f32.mrf.mxu3  ;;  %v553_v39 = vpop.f32.mrf.mxu1 }
 0x172   : >> { %v554_v50 = vadd.f32 %v553_v39, %v2806_v9 }
 0x173   : >> { %v857_v55 = vadd.f32 %v837_v46, %v704_v17 }
 0x174   : >> { %v990_v18 = vpop.f32.mrf.mxu0  ;;  %1889 = vmatmul.msk.f32.gmra.mxu1 %vm171_vm0, %v1973_v35 }
 0x175   : >> { %v2707_v26 = vadd.f32 %v987_v48, %v857_v55  ;;  %1925 = vmatmul.msk.f32.gmra.mxu2 %vm171_vm0, %v1907_v2 }
 0x176   : >> { %1959 = vmatmul.msk.f32.gmra.mxu3 %vm171_vm0, %v1941_v41 }
 0x177   : >> { %1993 = vmatmul.msk.f32.gmra.mxu0 %vm171_vm0, %v1975_v19 }
 0x178   : >> { %v687_v25 = vpop.f32.mrf.mxu2 }
 0x179   : >> { %v705_v47 = vadd.f32 %v687_v25, %v554_v50  ;;  %v840_v20 = vpop.f32.mrf.mxu3  ;;  %v1095_v21 = vpop.f32.mrf.mxu1 }
 0x17a   : >> { %v1143_v10 = vadd.f32 %v1095_v21, %v2554_v54 }
 0x17b   : >> { %v858_v32 = vadd.f32 %v840_v20, %v705_v47 }
 0x17c   : >> { %v1548_v60 = vpop.f32.mrf.mxu0 }
 0x17d   : >> { %v2714_v40 = vadd.f32 %v990_v18, %v858_v32 }
 0x180   : >> { %v1248_v53 = vpop.f32.mrf.mxu2 }
 0x181   : >> { %v1296_v23 = vadd.f32 %v1248_v53, %v1143_v10  ;;  %v1398_v24 = vpop.f32.mrf.mxu3  ;;  %v1098_v42 = vpop.f32.mrf.mxu1 }
 0x182   : >> { %v1144_v30 = vadd.f32 %v1098_v42, %v2564_v61 }
 0x183   : >> { %v1446_v22 = vadd.f32 %v1398_v24, %v1296_v23 }
 0x184   : >> { %v1551_v5 = vpop.f32.mrf.mxu0 }
 0x185   : >> { %v1596_v57 = vadd.f32 %v1548_v60, %v1446_v22 }
 0x187   : >> { %v1615_v54 = vadd.f32 %v2718_v4, %v1596_v57 }
 0x188   : >> { %v1251_v58 = vpop.f32.mrf.mxu2 }
 0x189   : >> { %1634 = vst.msk [vmem:[%s2722_s20] sm:$0xff] %vm1633_vm2, %v1615_v54  ;;  %v1297_v45 = vadd.f32 %v1251_v58, %v1144_v30  ;;  %v1401_v12 = vpop.f32.mrf.mxu3  ;;  %v1101_v13 = vpop.f32.mrf.mxu1 }
 0x18a   : >> { %v1145_v27 = vadd.f32 %v1101_v13, %v2574_v63 }
 0x18b   : >> { %v1447_v28 = vadd.f32 %v1401_v12, %v1297_v45 }
 0x18c   : >> { %v1554_v35 = vpop.f32.mrf.mxu0 }
 0x18d   : >> { %v1597_v36 = vadd.f32 %v1551_v5, %v1447_v28 }
 0x18f   : >> { %v1616_v38 = vadd.f32 %v2718_v4, %v1597_v36 }
 0x190   : >> { %v1254_v62 = vpop.f32.mrf.mxu2 }
 0x191   : >> { %1635 = vst.msk [vmem:[%s2722_s20 + $0x8] sm:$0xff] %vm1633_vm2, %v1616_v38  ;;  %v1298_v61 = vadd.f32 %v1254_v62, %v1145_v27  ;;  %v1404_v33 = vpop.f32.mrf.mxu3  ;;  %v1104_v52 = vpop.f32.mrf.mxu1 }
 0x192   : >> { %v1146_v6 = vadd.f32 %v1104_v52, %v2584_v3 }
 0x193   : >> { %v1448_v14 = vadd.f32 %v1404_v33, %v1298_v61 }
 0x194   : >> { %v1557_v15 = vpop.f32.mrf.mxu0 }
 0x195   : >> { %v1598_v34 = vadd.f32 %v1554_v35, %v1448_v14 }
 0x197   : >> { %v1617_v48 = vadd.f32 %v2718_v4, %v1598_v34 }
 0x198   : >> { %v1257_v7 = vpop.f32.mrf.mxu2 }
 0x199   : >> { %1636 = vst.msk [vmem:[%s2722_s20 + $0x10] sm:$0xff] %vm1633_vm2, %v1617_v48  ;;  %v1299_v63 = vadd.f32 %v1257_v7, %v1146_v6  ;;  %v1407_v37 = vpop.f32.mrf.mxu3  ;;  %v1107_v56 = vpop.f32.mrf.mxu1 }
 0x19a   : >> { %v1147_v39 = vadd.f32 %v1107_v56, %v2595_v59 }
 0x19b   : >> { %v1449_v16 = vadd.f32 %v1407_v37, %v1299_v63 }
 0x19c   : >> { %v1560_v17 = vpop.f32.mrf.mxu0 }
 0x19d   : >> { %v1599_v46 = vadd.f32 %v1557_v15, %v1449_v16 }
 0x19f   : >> { %v1618_v2 = vadd.f32 %v2718_v4, %v1599_v46 }
 0x1a0   : >> { %v1260_v55 = vpop.f32.mrf.mxu2 }
 0x1a1   : >> { %1637 = vst.msk [vmem:[%s2722_s20 + $0x18] sm:$0xff] %vm1633_vm2, %v1618_v2  ;;  %v1300_v3 = vadd.f32 %v1260_v55, %v1147_v39  ;;  %v1410_v41 = vpop.f32.mrf.mxu3  ;;  %v1110_v18 = vpop.f32.mrf.mxu1 }
 0x1a2   : >> { %v1148_v25 = vadd.f32 %v1110_v18, %v2606_v31 }
 0x1a3   : >> { %v1450_v19 = vadd.f32 %v1410_v41, %v1300_v3 }
 0x1a4   : >> { %v1563_v9 = vpop.f32.mrf.mxu0 }
 0x1a5   : >> { %v1600_v50 = vadd.f32 %v1560_v17, %v1450_v19 }
 0x1a7   : >> { %v1619_v47 = vadd.f32 %v2718_v4, %v1600_v50 }
 0x1a8   : >> { %v1263_v20 = vpop.f32.mrf.mxu2 }
 0x1a9   : >> { %1638 = vst.msk [vmem:[%s2722_s20 + $0x20] sm:$0xff] %vm1633_vm2, %v1619_v47  ;;  %v1301_v59 = vadd.f32 %v1263_v20, %v1148_v25  ;;  %v1413_v21 = vpop.f32.mrf.mxu3  ;;  %v1113_v32 = vpop.f32.mrf.mxu1 }
 0x1aa   : >> { %v1149_v23 = vadd.f32 %v1113_v32, %v2617_v51 }
 0x1ab   : >> { %v1451_v60 = vadd.f32 %v1413_v21, %v1301_v59 }
 0x1ac   : >> { %v1566_v10 = vpop.f32.mrf.mxu0 }
 0x1ad   : >> { %v1601_v53 = vadd.f32 %v1563_v9, %v1451_v60 }
 0x1af   : >> { %v1620_v24 = vadd.f32 %v2718_v4, %v1601_v53 }
 0x1b0   : >> { %v1266_v42 = vpop.f32.mrf.mxu2 }
 0x1b1   : >> { %1639 = vst.msk [vmem:[%s2722_s20 + $0x28] sm:$0xff] %vm1633_vm2, %v1620_v24  ;;  %v1302_v31 = vadd.f32 %v1266_v42, %v1149_v23  ;;  %v1416_v22 = vpop.f32.mrf.mxu3  ;;  %v1116_v44 = vpop.f32.mrf.mxu1 }
 0x1b2   : >> { %v1150_v54 = vadd.f32 %v1116_v44, %v2628_v0 }
 0x1b3   : >> { %v1452_v5 = vadd.f32 %v1416_v22, %v1302_v31 }
 0x1b4   : >> { %v1569_v57 = vpop.f32.mrf.mxu0 }
 0x1b5   : >> { %v1602_v30 = vadd.f32 %v1566_v10, %v1452_v5 }
 0x1b7   : >> { %v1621_v58 = vadd.f32 %v2718_v4, %v1602_v30 }
 0x1b8   : >> { %v1269_v45 = vpop.f32.mrf.mxu2 }
 0x1b9   : >> { %1640 = vst.msk [vmem:[%s2722_s20 + $0x30] sm:$0xff] %vm1633_vm2, %v1621_v58  ;;  %v1303_v51 = vadd.f32 %v1269_v45, %v1150_v54  ;;  %v1419_v12 = vpop.f32.mrf.mxu3  ;;  %v1119_v13 = vpop.f32.mrf.mxu1 }
 0x1ba   : >> { %v1151_v27 = vadd.f32 %v1119_v13, %v2639_v8 }
 0x1bb   : >> { %v1453_v28 = vadd.f32 %v1419_v12, %v1303_v51 }
 0x1bc   : >> { %v1572_v35 = vpop.f32.mrf.mxu0 }
 0x1bd   : >> { %v1603_v36 = vadd.f32 %v1569_v57, %v1453_v28 }
 0x1bf   : >> { %v1622_v38 = vadd.f32 %v2718_v4, %v1603_v36 }
 0x1c0   : >> { %v1272_v62 = vpop.f32.mrf.mxu2 }
 0x1c1   : >> { %1641 = vst.msk [vmem:[%s2722_s20 + $0x38] sm:$0xff] %vm1633_vm2, %v1622_v38  ;;  %v1304_v0 = vadd.f32 %v1272_v62, %v1151_v27  ;;  %v1422_v61 = vpop.f32.mrf.mxu3  ;;  %v1122_v33 = vpop.f32.mrf.mxu1 }
 0x1c2   : >> { %v1152_v34 = vadd.f32 %v1122_v33, %v2650_v1 }
 0x1c3   : >> { %v1454_v52 = vadd.f32 %v1422_v61, %v1304_v0 }
 0x1c4   : >> { %v1575_v14 = vpop.f32.mrf.mxu0 }
 0x1c5   : >> { %v1604_v15 = vadd.f32 %v1572_v35, %v1454_v52 }
 0x1c7   : >> { %v1623_v6 = vadd.f32 %v2718_v4, %v1604_v15 }
 0x1c8   : >> { %v1275_v48 = vpop.f32.mrf.mxu2 }
 0x1c9   : >> { %1642 = vst.msk [vmem:[%s2722_s20 + $0x40] sm:$0xff] %vm1633_vm2, %v1623_v6  ;;  %v1305_v8 = vadd.f32 %v1275_v48, %v1152_v34  ;;  %v1425_v7 = vpop.f32.mrf.mxu3  ;;  %v1125_v63 = vpop.f32.mrf.mxu1 }
 0x1ca   : >> { %v1153_v17 = vadd.f32 %v1125_v63, %v2661_v11 }
 0x1cb   : >> { %v1455_v37 = vadd.f32 %v1425_v7, %v1305_v8 }
 0x1cc   : >> { %v1578_v56 = vpop.f32.mrf.mxu0 }
 0x1cd   : >> { %v1605_v16 = vadd.f32 %v1575_v14, %v1455_v37 }
 0x1cf   : >> { %v1624_v46 = vadd.f32 %v2718_v4, %v1605_v16 }
 0x1d0   : >> { %v1278_v39 = vpop.f32.mrf.mxu2 }
 0x1d1   : >> { %1643 = vst.msk [vmem:[%s2722_s20 + $0x48] sm:$0xff] %vm1633_vm2, %v1624_v46  ;;  %v1306_v1 = vadd.f32 %v1278_v39, %v1153_v17  ;;  %v1428_v2 = vpop.f32.mrf.mxu3  ;;  %v1128_v55 = vpop.f32.mrf.mxu1 }
 0x1d2   : >> { %v1154_v19 = vadd.f32 %v1128_v55, %v2673_v29 }
 0x1d3   : >> { %v1456_v3 = vadd.f32 %v1428_v2, %v1306_v1 }
 0x1d4   : >> { %v1581_v41 = vpop.f32.mrf.mxu0 }
 0x1d5   : >> { %v1606_v18 = vadd.f32 %v1578_v56, %v1456_v3 }
 0x1d7   : >> { %v1625_v9 = vadd.f32 %v2718_v4, %v1606_v18 }
 0x1d8   : >> { %v1281_v50 = vpop.f32.mrf.mxu2 }
 0x1d9   : >> { %1644 = vst.msk [vmem:[%s2722_s20 + $0x50] sm:$0xff] %vm1633_vm2, %v1625_v9  ;;  %v1307_v11 = vadd.f32 %v1281_v50, %v1154_v19  ;;  %v1431_v25 = vpop.f32.mrf.mxu3  ;;  %v1131_v47 = vpop.f32.mrf.mxu1 }
 0x1da   : >> { %v1155_v32 = vadd.f32 %v1131_v47, %v2684_v43 }
 0x1db   : >> { %v1457_v20 = vadd.f32 %v1431_v25, %v1307_v11 }
 0x1dc   : >> { %v1584_v59 = vpop.f32.mrf.mxu0 }
 0x1dd   : >> { %v1607_v21 = vadd.f32 %v1581_v41, %v1457_v20 }
 0x1df   : >> { %v1626_v60 = vadd.f32 %v2718_v4, %v1607_v21 }
 0x1e0   : >> { %v1284_v10 = vpop.f32.mrf.mxu2 }
 0x1e1   : >> { %1645 = vst.msk [vmem:[%s2722_s20 + $0x58] sm:$0xff] %vm1633_vm2, %v1626_v60  ;;  %v1308_v29 = vadd.f32 %v1284_v10, %v1155_v32  ;;  %v1434_v53 = vpop.f32.mrf.mxu3  ;;  %v1134_v23 = vpop.f32.mrf.mxu1 }
 0x1e2   : >> { %v1156_v22 = vadd.f32 %v1134_v23, %v2697_v49 }
 0x1e3   : >> { %v1458_v24 = vadd.f32 %v1434_v53, %v1308_v29 }
 0x1e4   : >> { %v1587_v31 = vpop.f32.mrf.mxu0 }
 0x1e5   : >> { %v1608_v42 = vadd.f32 %v1584_v59, %v1458_v24 }
 0x1e7   : >> { %v1627_v44 = vadd.f32 %v2718_v4, %v1608_v42 }
 0x1e8   : >> { %v1287_v5 = vpop.f32.mrf.mxu2 }
 0x1e9   : >> { %1646 = vst.msk [vmem:[%s2722_s20 + $0x60] sm:$0xff] %vm1633_vm2, %v1627_v44  ;;  %v1309_v43 = vadd.f32 %v1287_v5, %v1156_v22  ;;  %v1437_v57 = vpop.f32.mrf.mxu3  ;;  %v1137_v30 = vpop.f32.mrf.mxu1 }
 0x1ea   : >> { %v1157_v45 = vadd.f32 %v1137_v30, %v2707_v26 }
 0x1eb   : >> { %v1459_v54 = vadd.f32 %v1437_v57, %v1309_v43 }
 0x1ec   : >> { %v1590_v13 = vpop.f32.mrf.mxu0 }
 0x1ed   : >> { %v1609_v58 = vadd.f32 %v1587_v31, %v1459_v54 }
 0x1ef   : >> { %v1628_v51 = vadd.f32 %v2718_v4, %v1609_v58 }
 0x1f0   : >> { %v1290_v12 = vpop.f32.mrf.mxu2 }
 0x1f1   : >> { %1647 = vst.msk [vmem:[%s2722_s20 + $0x68] sm:$0xff] %vm1633_vm2, %v1628_v51  ;;  %v1310_v49 = vadd.f32 %v1290_v12, %v1157_v45  ;;  %v1440_v28 = vpop.f32.mrf.mxu3  ;;  %v1140_v36 = vpop.f32.mrf.mxu1 }
 0x1f2   : >> { %v1158_v38 = vadd.f32 %v1140_v36, %v2714_v40 }
 0x1f3   : >> { %v1460_v35 = vadd.f32 %v1440_v28, %v1310_v49 }
 0x1f4   : >> { %v1593_v33 = vpop.f32.mrf.mxu0 }
 0x1f5   : >> { %v1610_v27 = vadd.f32 %v1590_v13, %v1460_v35 }
 0x1f7   : >> { %v1629_v62 = vadd.f32 %v2718_v4, %v1610_v27 }
 0x1f8   : >> { %v1293_v0 = vpop.f32.mrf.mxu2 }
 0x1f9   : >> { %1648 = vst.msk [vmem:[%s2722_s20 + $0x70] sm:$0xff] %vm1633_vm2, %v1629_v62  ;;  %v1311_v26 = vadd.f32 %v1293_v0, %v1158_v38  ;;  %v1443_v61 = vpop.f32.mrf.mxu3 }
 0x1fb   : >> { %v1461_v52 = vadd.f32 %v1443_v61, %v1311_v26 }
 0x1fd   : >> { %v1611_v14 = vadd.f32 %v1593_v33, %v1461_v52  ;;  %283 = sbr.rel (!%p281_p4) target bundleno = 85 (0x55), region = 83 }
 0x1ff   : >> { %v1630_v15 = vadd.f32 %v2718_v4, %v1611_v14 }
 0x201   : >> { %1649 = vst.msk [vmem:[%s2722_s20 + $0x78] sm:$0xff] %vm1633_vm2, %v1630_v15 }
 0x202 PF: > { %s13_s12 = sadd.s32 1, %s2032_s12  }
 0x203   : > { %p10_p5 = scmp.ge.s32.totalorder %s13_s12, 4  }
 0x205   :  { %12 = sbr.rel (!%p10_p5) target bundleno = 1 (0x1), region = 94 }

</bundles_post_ra>
